<compile_context>
chip_gen: v7x
topology: tpu7x:2x2x1
jax: 0.10.0
libtpu: 0.0.40
codegen_flags: <defaults>
</compile_context>

<pallas_src>
import jax
import jax.numpy as jnp
from jax.experimental import pallas as pl
from jax.experimental.pallas import tpu as pltpu

LANES = 128  # TPU vreg lane width; narrow results are zero-padded to this for unmasked stores.


# ----------------------------- fused Pallas kernel -----------------------------

def _track_gnn_kernel(x_ref,
                      wih0_ref, whh0_ref, b0_ref, wih1_ref, whh1_ref, b1_ref,
                      ew1_ref, eb1_ref, ew2_ref, eb2_ref,
                      a_ref, gsrc_ref, gdst_ref,
                      g0w_ref, g0b_ref, g1w_ref, g1b_ref, g2w_ref, g2b_ref,
                      e1a_ref, e1b_ref, e1bias_ref, e2w_ref, e2b_ref, e3w_ref, e3b_ref,
                      c1w_ref, c1b_ref, c2w_ref, c2b_ref,
                      u1w_ref, u1b_ref, u2w_ref, u2b_ref,
                      nodes_ref, edges_ref):
    """Encoder (2-layer LSTM + MLP) -> 3-layer GCN -> edge/class/uncertainty heads."""
    N = a_ref.shape[0]
    E = gsrc_ref.shape[0]
    TN, _ = x_ref.shape
    T = TN // N
    H = whh0_ref.shape[0]

    # --- TrackEncoder -------------------------------------------------------
    # Layer-0 input projection (and its bias) hoisted out of the recurrence:
    # one (T*N, Din) x (Din, 4H) matmul off the serial h/c dependency chain.
    xw0 = (jnp.dot(x_ref[...], wih0_ref[...], preferred_element_type=jnp.float32)
           + b0_ref[...])                                           # (T*N, 4H) f32
    whh0 = whh0_ref[...]
    wih1 = wih1_ref[...]
    whh1 = whh1_ref[...]
    b1_full = jnp.broadcast_to(b1_ref[...], (N, 4 * H))             # hoisted broadcast (once)

    def lstm_gates(pre, c):
        # Gate column order is [i, f, o, g] (set at init): sigmoid over the first 3H
        # lanes only, tanh over the last H only (halves EUP work per cell).
        sg = jax.nn.sigmoid(pre[:, :3 * H])
        g = jnp.tanh(pre[:, 3 * H:])
        i = sg[:, :H]
        f = sg[:, H:2 * H]
        o = sg[:, 2 * H:]
        c_new = f * c + i * g                                       # f32 elementwise (v5e-safe)
        h_new = o * jnp.tanh(c_new)
        return h_new, c_new

    h0 = jnp.zeros((N, H), jnp.float32)
    c0 = jnp.zeros((N, H), jnp.float32)
    h1 = jnp.zeros((N, H), jnp.float32)
    c1 = jnp.zeros((N, H), jnp.float32)
    for t in range(T):                        # T is static; xw0 slices are static & sublane-aligned
        pre0 = xw0[t * N:(t + 1) * N] + jnp.dot(
            h0.astype(jnp.bfloat16), whh0, preferred_element_type=jnp.float32)
        h0, c0 = lstm_gates(pre0, c0)
        # TODO(synk): nn.LSTM inter-layer dropout (p=0.2) is identity in eval mode.
        pre1 = (jnp.dot(h0.astype(jnp.bfloat16), wih1, preferred_element_type=jnp.float32)
                + jnp.dot(h1.astype(jnp.bfloat16), whh1, preferred_element_type=jnp.float32)
                + b1_full)
        h1, c1 = lstm_gates(pre1, c1)

    z = jnp.maximum(
        jnp.dot(h1.astype(jnp.bfloat16), ew1_ref[...], preferred_element_type=jnp.float32)
        + eb1_ref[...], 0.0)
    latent = (jnp.dot(z.astype(jnp.bfloat16), ew2_ref[...], preferred_element_type=jnp.float32)
              + eb2_ref[...])                                       # (N, L) f32, never leaves VMEM

    # --- GCN stack: relu(A_hat @ (X @ W) + b); A_hat is bf16 (MXU fast path) ---
    a_hat = a_ref[...]

    def gcn_relu(x, w_ref, b_ref):
        xw = jnp.dot(x.astype(jnp.bfloat16), w_ref[...], preferred_element_type=jnp.float32)
        y = (jnp.dot(a_hat, xw.astype(jnp.bfloat16), preferred_element_type=jnp.float32)
             + b_ref[...])
        return jnp.maximum(y, 0.0)

    x = gcn_relu(latent, g0w_ref, g0b_ref)
    x = gcn_relu(x, g1w_ref, g1b_ref)
    x = gcn_relu(x, g2w_ref, g2b_ref)
    # TODO(synk): F.dropout(p=0.2) after each GCN layer is identity in eval mode.

    def dense(v, w_ref, b_ref):
        return (jnp.dot(v.astype(jnp.bfloat16), w_ref[...], preferred_element_type=jnp.float32)
                + b_ref[...])

    # --- EdgePredictor: x[src]/x[dst] via exact bf16 one-hot matmuls, split edge_fc1 ---
    xb = x.astype(jnp.bfloat16)
    x_src = jnp.dot(gsrc_ref[...], xb, preferred_element_type=jnp.float32)   # (E, H)
    x_dst = jnp.dot(gdst_ref[...], xb, preferred_element_type=jnp.float32)   # (E, H)
    e = jnp.maximum(
        jnp.dot(x_src.astype(jnp.bfloat16), e1a_ref[...], preferred_element_type=jnp.float32)
        + jnp.dot(x_dst.astype(jnp.bfloat16), e1b_ref[...], preferred_element_type=jnp.float32)
        + e1bias_ref[...], 0.0)
    e = jnp.maximum(dense(e, e2w_ref, e2b_ref), 0.0)
    edge_pred = jax.nn.sigmoid(dense(e, e3w_ref, e3b_ref))                   # (E, 1)

    # --- classifier / uncertainty heads ---
    c = jnp.maximum(dense(x, c1w_ref, c1b_ref), 0.0)
    logits = dense(c, c2w_ref, c2b_ref)                                      # (N, 4)
    u = jnp.maximum(dense(x, u1w_ref, u1b_ref), 0.0)
    unc = jax.nn.softplus(dense(u, u2w_ref, u2b_ref))                        # (N, 1)

    # --- pack narrow results into lane-dense (., 128) outputs (unmasked dense stores) ---
    n_pad = nodes_ref.shape[1] - (H + logits.shape[1] + 1)
    nodes_ref[...] = jnp.concatenate(
        [x, logits, unc, jnp.zeros((N, n_pad), jnp.float32)], axis=1)
    edges_ref[...] = jnp.concatenate(
        [edge_pred, jnp.zeros((E, edges_ref.shape[1] - 1), jnp.float32)], axis=1)


# ----------------------------- Pallas wrapper -----------------------------

def pallas_track_gnn(x_2d_bf16, a_hat, g_src, g_dst, p):
    N = a_hat.shape[0]
    E = g_src.shape[0]
    assert len(p["gcn"]) == 3, "fused kernel assumes num_gcn_layers == 3"
    wih0, whh0, b0 = p["lstm0"]
    wih1, whh1, b1 = p["lstm1"]
    ew1, eb1 = p["enc_fc1"]
    ew2, eb2 = p["enc_fc2"]
    (g0w, g0b), (g1w, g1b), (g2w, g2b) = p["gcn"]
    e1a, e1b, e1bias = p["edge_fc1"]
    e2w, e2b = p["edge_fc2"]
    e3w, e3b = p["edge_fc3"]
    c1w, c1b = p["cls_fc1"]
    c2w, c2b = p["cls_fc2"]
    u1w, u1b = p["unc_fc1"]
    u2w, u2b = p["unc_fc2"]
    H = whh0.shape[0]
    L = ew2.shape[1]
    T = x_2d_bf16.shape[0] // N
    Din = x_2d_bf16.shape[1]

    args = (x_2d_bf16,
            wih0, whh0, b0, wih1, whh1, b1,
            ew1, eb1, ew2, eb2,
            a_hat, g_src, g_dst,
            g0w, g0b, g1w, g1b, g2w, g2b,
            e1a, e1b, e1bias, e2w, e2b, e3w, e3b,
            c1w, c1b, c2w, c2b,
            u1w, u1b, u2w, u2b)
    vmem = pl.BlockSpec(memory_space=pltpu.MemorySpace.VMEM)

    flops = (2 * T * N * Din * 4 * H                               # hoisted input projection
             + T * 3 * 2 * N * H * 4 * H                           # recurrent matmuls
             + 2 * N * H * (H + L)                                 # encoder MLP
             + 2 * N * H * (L + 2 * H) + 3 * 2 * N * N * H         # GCN stack
             + 2 * 2 * E * N * H                                   # one-hot gathers
             + 2 * E * (2 * H * H + H * (H // 2) + (H // 2))       # edge MLP
             + 2 * N * (2 * H * (H // 2) + 5 * (H // 2)))          # cls + unc heads
    transcendentals = T * 2 * N * 5 * H + E + 2 * N
    bytes_accessed = (sum(int(a.size) * a.dtype.itemsize for a in args)
                      + (N + E) * LANES * 4)

    return pl.pallas_call(
        _track_gnn_kernel,
        out_shape=(jax.ShapeDtypeStruct((N, LANES), jnp.float32),
                   jax.ShapeDtypeStruct((E, LANES), jnp.float32)),
        in_specs=[vmem] * len(args),
        out_specs=(vmem, vmem),
        cost_estimate=pl.CostEstimate(
            flops=flops, transcendentals=transcendentals, bytes_accessed=bytes_accessed),
    )(*args)


# ----------------------------- graph preprocessing (static per event) -----------------------------

def build_graph_operators(edge_index, num_nodes):
    """A_hat = D^-1/2 (A + I) D^-1/2 and one-hot src/dst gather operators.

    Hoisted out of the jitted forward: the graph is static per event, so the XLA
    scatter / one_hot ops run once.  bf16 one-hot is exact; bf16 A_hat trades ~3
    decimal digits of the degree normalisation for the MXU fast path.
    """
    src, dst = edge_index[0], edge_index[1]
    A = jnp.zeros((num_nodes, num_nodes), jnp.float32).at[dst, src].set(1.0)
    A = A + jnp.eye(num_nodes, dtype=jnp.float32)
    dinv = 1.0 / jnp.sqrt(A.sum(axis=1))
    a_hat = (dinv[:, None] * A * dinv[None, :]).astype(jnp.bfloat16)
    g_src = jax.nn.one_hot(src, num_nodes, dtype=jnp.bfloat16)      # (E, N)
    g_dst = jax.nn.one_hot(dst, num_nodes, dtype=jnp.bfloat16)      # (E, N)
    return a_hat, g_src, g_dst


# ----------------------------- parameters -----------------------------

def _dense(key, fan_in, fan_out, scale=0.1):
    """Weights in bf16 (MXU operand dtype), bias in f32, layout (in, out)."""
    kw, kb = jax.random.split(key)
    w = (scale * jax.random.normal(kw, (fan_in, fan_out))).astype(jnp.bfloat16)
    b = (scale * jax.random.normal(kb, (1, fan_out))).astype(jnp.float32)
    return w, b


def init_params(key, input_dim, hidden_dim, latent_dim, num_gcn_layers):
    keys = jax.random.split(key, 32)
    k = iter(keys)
    p = {}
    # LSTM (2 layers), stored transposed: W_ih^T (Din,4H), W_hh^T (H,4H), bias = b_ih + b_hh.
    # Gate columns are ordered [i, f, o, g] (a PyTorch checkpoint's [i, f, g, o] columns
    # would need permuting) so the kernel can sigmoid 3H lanes and tanh only the last H.
    for li, din in enumerate([input_dim, hidden_dim]):
        wih, bih = _dense(next(k), din, 4 * hidden_dim)
        whh, bhh = _dense(next(k), hidden_dim, 4 * hidden_dim)
        p[f"lstm{li}"] = (wih, whh, bih + bhh)
    p["enc_fc1"] = _dense(next(k), hidden_dim, hidden_dim)
    p["enc_fc2"] = _dense(next(k), hidden_dim, latent_dim)
    gcn = []
    for i in range(num_gcn_layers):
        din = latent_dim if i == 0 else hidden_dim
        gcn.append(_dense(next(k), din, hidden_dim))
    p["gcn"] = gcn
    # EdgePredictor fc1 (2H -> H) split into src/dst halves (avoids an in-kernel lane concat).
    w1, b1 = _dense(next(k), 2 * hidden_dim, hidden_dim)
    p["edge_fc1"] = (w1[:hidden_dim], w1[hidden_dim:], b1)
    p["edge_fc2"] = _dense(next(k), hidden_dim, hidden_dim // 2)
    p["edge_fc3"] = _dense(next(k), hidden_dim // 2, 1)
    p["cls_fc1"] = _dense(next(k), hidden_dim, hidden_dim // 2)
    p["cls_fc2"] = _dense(next(k), hidden_dim // 2, 4)
    p["unc_fc1"] = _dense(next(k), hidden_dim, hidden_dim // 2)
    p["unc_fc2"] = _dense(next(k), hidden_dim // 2, 1)
    return p


# ----------------------------- forward -----------------------------

def track_gnn_forward(params, track_sequences, a_hat, g_src, g_dst):
    N, T, Din = track_sequences.shape
    H = params["lstm0"][1].shape[0]
    # time-major, flattened to (T*N, Din) so the layer-0 input projection is one matmul
    x_2d = jnp.transpose(track_sequences, (1, 0, 2)).reshape(T * N, Din).astype(jnp.bfloat16)

    nodes_packed, edges_packed = pallas_track_gnn(x_2d, a_hat, g_src, g_dst, params)

    node_features = nodes_packed[:, :H]
    track_classes = nodes_packed[:, H:H + 4]
    uncertainties = nodes_packed[:, H + 4:H + 5]
    edge_pred = edges_packed[:, :1]
    return {
        "node_features": node_features,
        "edge_pred": edge_pred,
        "track_classes": track_classes,
        "uncertainties": uncertainties,
    }


# ----------------------------- main -----------------------------

if __name__ == "__main__":
    N, T, INPUT_DIM = 8, 8, 8          # tracks, timesteps, per-step features
    HIDDEN_DIM, LATENT_DIM = 32, 16
    NUM_GCN_LAYERS = 3

    key = jax.random.PRNGKey(0)
    k_par, k_seq = jax.random.split(key)

    params = init_params(k_par, INPUT_DIM, HIDDEN_DIM, LATENT_DIM, NUM_GCN_LAYERS)

    track_sequences = jax.random.normal(k_seq, (N, T, INPUT_DIM), dtype=jnp.float32)
    # deterministic bidirectional ring graph: E = 16 edges
    src = jnp.concatenate([jnp.arange(N), (jnp.arange(N) + 1) % N]).astype(jnp.int32)
    dst = jnp.concatenate([(jnp.arange(N) + 1) % N, jnp.arange(N)]).astype(jnp.int32)
    edge_index = jnp.stack([src, dst], axis=0)                               # (2, 16)

    # Static-per-event graph operators built once, outside the jitted forward.
    a_hat, g_src, g_dst = build_graph_operators(edge_index, N)

    fwd = jax.jit(track_gnn_forward)
    out = fwd(params, track_sequences, a_hat, g_src, g_dst)
    out = jax.block_until_ready(out)

    assert out["node_features"].shape == (N, HIDDEN_DIM)
    assert out["edge_pred"].shape == (edge_index.shape[1], 1)
    assert out["track_classes"].shape == (N, 4)
    assert out["uncertainties"].shape == (N, 1)
    print("KERNEL_OK")
</pallas_src>

<mosaic_0001>
module attributes {stable_mosaic.version = 11 : i64} {
  func.func @_track_gnn_kernel(%arg0: memref<64x8xbf16, #tpu.memory_space<vmem>>, %arg1: memref<8x128xbf16, #tpu.memory_space<vmem>>, %arg2: memref<32x128xbf16, #tpu.memory_space<vmem>>, %arg3: memref<1x128xf32, #tpu.memory_space<vmem>>, %arg4: memref<32x128xbf16, #tpu.memory_space<vmem>>, %arg5: memref<32x128xbf16, #tpu.memory_space<vmem>>, %arg6: memref<1x128xf32, #tpu.memory_space<vmem>>, %arg7: memref<32x32xbf16, #tpu.memory_space<vmem>>, %arg8: memref<1x32xf32, #tpu.memory_space<vmem>>, %arg9: memref<32x16xbf16, #tpu.memory_space<vmem>>, %arg10: memref<1x16xf32, #tpu.memory_space<vmem>>, %arg11: memref<8x8xbf16, #tpu.memory_space<vmem>>, %arg12: memref<16x8xbf16, #tpu.memory_space<vmem>>, %arg13: memref<16x8xbf16, #tpu.memory_space<vmem>>, %arg14: memref<16x32xbf16, #tpu.memory_space<vmem>>, %arg15: memref<1x32xf32, #tpu.memory_space<vmem>>, %arg16: memref<32x32xbf16, #tpu.memory_space<vmem>>, %arg17: memref<1x32xf32, #tpu.memory_space<vmem>>, %arg18: memref<32x32xbf16, #tpu.memory_space<vmem>>, %arg19: memref<1x32xf32, #tpu.memory_space<vmem>>, %arg20: memref<32x32xbf16, #tpu.memory_space<vmem>>, %arg21: memref<32x32xbf16, #tpu.memory_space<vmem>>, %arg22: memref<1x32xf32, #tpu.memory_space<vmem>>, %arg23: memref<32x16xbf16, #tpu.memory_space<vmem>>, %arg24: memref<1x16xf32, #tpu.memory_space<vmem>>, %arg25: memref<16x1xbf16, #tpu.memory_space<vmem>>, %arg26: memref<1x1xf32, #tpu.memory_space<vmem>>, %arg27: memref<32x16xbf16, #tpu.memory_space<vmem>>, %arg28: memref<1x16xf32, #tpu.memory_space<vmem>>, %arg29: memref<16x4xbf16, #tpu.memory_space<vmem>>, %arg30: memref<1x4xf32, #tpu.memory_space<vmem>>, %arg31: memref<32x16xbf16, #tpu.memory_space<vmem>>, %arg32: memref<1x16xf32, #tpu.memory_space<vmem>>, %arg33: memref<16x1xbf16, #tpu.memory_space<vmem>>, %arg34: memref<1x1xf32, #tpu.memory_space<vmem>>, %arg35: memref<8x128xf32, #tpu.memory_space<vmem>>, %arg36: memref<16x128xf32, #tpu.memory_space<vmem>>) attributes {dimension_semantics = [], scalar_prefetch = 0 : i64, scratch_operands = 0 : i64, tpu.core_type = #tpu.core_type<tc>} {
    %c0 = arith.constant 0 : index
    %c0_0 = arith.constant 0 : index
    %0 = vector.load %arg0[%c0, %c0_0] : memref<64x8xbf16, #tpu.memory_space<vmem>>, vector<64x8xbf16>
    %c0_1 = arith.constant 0 : index
    %c0_2 = arith.constant 0 : index
    %1 = vector.load %arg1[%c0_1, %c0_2] : memref<8x128xbf16, #tpu.memory_space<vmem>>, vector<8x128xbf16>
    %cst = arith.constant dense<0.000000e+00> : vector<64x128xf32>
    %2 = tpu.matmul %0, %1, %cst {dimension_numbers = #tpu.dot_dimension_numbers<[1], [0], [0], [1], [0, 0, 1, 1], [], []>} : vector<64x8xbf16>, vector<8x128xbf16>, vector<64x128xf32> -> vector<64x128xf32>
    %c0_3 = arith.constant 0 : index
    %c0_4 = arith.constant 0 : index
    %3 = vector.load %arg3[%c0_3, %c0_4] : memref<1x128xf32, #tpu.memory_space<vmem>>, vector<1x128xf32>
    %4 = vector.broadcast %3 : vector<1x128xf32> to vector<64x128xf32>
    %5 = arith.addf %2, %4 : vector<64x128xf32>
    %c0_5 = arith.constant 0 : index
    %c0_6 = arith.constant 0 : index
    %6 = vector.load %arg2[%c0_5, %c0_6] : memref<32x128xbf16, #tpu.memory_space<vmem>>, vector<32x128xbf16>
    %c0_7 = arith.constant 0 : index
    %c0_8 = arith.constant 0 : index
    %7 = vector.load %arg4[%c0_7, %c0_8] : memref<32x128xbf16, #tpu.memory_space<vmem>>, vector<32x128xbf16>
    %c0_9 = arith.constant 0 : index
    %c0_10 = arith.constant 0 : index
    %8 = vector.load %arg5[%c0_9, %c0_10] : memref<32x128xbf16, #tpu.memory_space<vmem>>, vector<32x128xbf16>
    %c0_11 = arith.constant 0 : index
    %c0_12 = arith.constant 0 : index
    %9 = vector.load %arg6[%c0_11, %c0_12] : memref<1x128xf32, #tpu.memory_space<vmem>>, vector<1x128xf32>
    %10 = vector.shape_cast %9 : vector<1x128xf32> to vector<1x128xf32>
    %11 = vector.broadcast %10 : vector<1x128xf32> to vector<8x128xf32>
    %cst_13 = arith.constant 0.000000e+00 : f32
    %12 = vector.broadcast %cst_13 : f32 to vector<8x32xf32>
    %cst_14 = arith.constant 0.000000e+00 : f32
    %13 = vector.broadcast %cst_14 : f32 to vector<8x32xf32>
    %cst_15 = arith.constant 0.000000e+00 : f32
    %14 = vector.broadcast %cst_15 : f32 to vector<8x32xf32>
    %cst_16 = arith.constant 0.000000e+00 : f32
    %15 = vector.broadcast %cst_16 : f32 to vector<8x32xf32>
    %16 = vector.extract_strided_slice %5 {offsets = [0, 0], sizes = [8, 128], strides = [1, 1]} : vector<64x128xf32> to vector<8x128xf32>
    %17 = arith.truncf %12 : vector<8x32xf32> to vector<8x32xbf16>
    %cst_17 = arith.constant dense<0.000000e+00> : vector<8x128xf32>
    %18 = tpu.matmul %17, %6, %cst_17 {dimension_numbers = #tpu.dot_dimension_numbers<[1], [0], [0], [1], [0, 0, 1, 1], [], []>} : vector<8x32xbf16>, vector<32x128xbf16>, vector<8x128xf32> -> vector<8x128xf32>
    %19 = arith.addf %16, %18 : vector<8x128xf32>
    %20 = vector.extract_strided_slice %19 {offsets = [0, 0], sizes = [8, 96], strides = [1, 1]} : vector<8x128xf32> to vector<8x96xf32>
    %21 = arith.negf %20 : vector<8x96xf32>
    %22 = math.exp %21 : vector<8x96xf32>
    %cst_18 = arith.constant 1.000000e+00 : f32
    %23 = vector.broadcast %cst_18 : f32 to vector<8x96xf32>
    %24 = arith.addf %23, %22 : vector<8x96xf32>
    %25 = arith.divf %23, %24 : vector<8x96xf32>
    %26 = vector.extract_strided_slice %19 {offsets = [0, 96], sizes = [8, 32], strides = [1, 1]} : vector<8x128xf32> to vector<8x32xf32>
    %27 = math.tanh %26 : vector<8x32xf32>
    %28 = vector.extract_strided_slice %25 {offsets = [0, 0], sizes = [8, 32], strides = [1, 1]} : vector<8x96xf32> to vector<8x32xf32>
    %29 = vector.extract_strided_slice %25 {offsets = [0, 32], sizes = [8, 32], strides = [1, 1]} : vector<8x96xf32> to vector<8x32xf32>
    %30 = vector.extract_strided_slice %25 {offsets = [0, 64], sizes = [8, 32], strides = [1, 1]} : vector<8x96xf32> to vector<8x32xf32>
    %31 = arith.mulf %29, %13 : vector<8x32xf32>
    %32 = arith.mulf %28, %27 : vector<8x32xf32>
    %33 = arith.addf %31, %32 : vector<8x32xf32>
    %34 = math.tanh %33 : vector<8x32xf32>
    %35 = arith.mulf %30, %34 : vector<8x32xf32>
    %36 = arith.truncf %35 : vector<8x32xf32> to vector<8x32xbf16>
    %cst_19 = arith.constant dense<0.000000e+00> : vector<8x128xf32>
    %37 = tpu.matmul %36, %7, %cst_19 {dimension_numbers = #tpu.dot_dimension_numbers<[1], [0], [0], [1], [0, 0, 1, 1], [], []>} : vector<8x32xbf16>, vector<32x128xbf16>, vector<8x128xf32> -> vector<8x128xf32>
    %38 = arith.truncf %14 : vector<8x32xf32> to vector<8x32xbf16>
    %cst_20 = arith.constant dense<0.000000e+00> : vector<8x128xf32>
    %39 = tpu.matmul %38, %8, %cst_20 {dimension_numbers = #tpu.dot_dimension_numbers<[1], [0], [0], [1], [0, 0, 1, 1], [], []>} : vector<8x32xbf16>, vector<32x128xbf16>, vector<8x128xf32> -> vector<8x128xf32>
    %40 = arith.addf %37, %39 : vector<8x128xf32>
    %41 = arith.addf %40, %11 : vector<8x128xf32>
    %42 = vector.extract_strided_slice %41 {offsets = [0, 0], sizes = [8, 96], strides = [1, 1]} : vector<8x128xf32> to vector<8x96xf32>
    %43 = arith.negf %42 : vector<8x96xf32>
    %44 = math.exp %43 : vector<8x96xf32>
    %cst_21 = arith.constant 1.000000e+00 : f32
    %45 = vector.broadcast %cst_21 : f32 to vector<8x96xf32>
    %46 = arith.addf %45, %44 : vector<8x96xf32>
    %47 = arith.divf %45, %46 : vector<8x96xf32>
    %48 = vector.extract_strided_slice %41 {offsets = [0, 96], sizes = [8, 32], strides = [1, 1]} : vector<8x128xf32> to vector<8x32xf32>
    %49 = math.tanh %48 : vector<8x32xf32>
    %50 = vector.extract_strided_slice %47 {offsets = [0, 0], sizes = [8, 32], strides = [1, 1]} : vector<8x96xf32> to vector<8x32xf32>
    %51 = vector.extract_strided_slice %47 {offsets = [0, 32], sizes = [8, 32], strides = [1, 1]} : vector<8x96xf32> to vector<8x32xf32>
    %52 = vector.extract_strided_slice %47 {offsets = [0, 64], sizes = [8, 32], strides = [1, 1]} : vector<8x96xf32> to vector<8x32xf32>
    %53 = arith.mulf %51, %15 : vector<8x32xf32>
    %54 = arith.mulf %50, %49 : vector<8x32xf32>
    %55 = arith.addf %53, %54 : vector<8x32xf32>
    %56 = math.tanh %55 : vector<8x32xf32>
    %57 = arith.mulf %52, %56 : vector<8x32xf32>
    %58 = vector.extract_strided_slice %5 {offsets = [8, 0], sizes = [8, 128], strides = [1, 1]} : vector<64x128xf32> to vector<8x128xf32>
    %59 = arith.truncf %35 : vector<8x32xf32> to vector<8x32xbf16>
    %cst_22 = arith.constant dense<0.000000e+00> : vector<8x128xf32>
    %60 = tpu.matmul %59, %6, %cst_22 {dimension_numbers = #tpu.dot_dimension_numbers<[1], [0], [0], [1], [0, 0, 1, 1], [], []>} : vector<8x32xbf16>, vector<32x128xbf16>, vector<8x128xf32> -> vector<8x128xf32>
    %61 = arith.addf %58, %60 : vector<8x128xf32>
    %62 = vector.extract_strided_slice %61 {offsets = [0, 0], sizes = [8, 96], strides = [1, 1]} : vector<8x128xf32> to vector<8x96xf32>
    %63 = arith.negf %62 : vector<8x96xf32>
    %64 = math.exp %63 : vector<8x96xf32>
    %cst_23 = arith.constant 1.000000e+00 : f32
    %65 = vector.broadcast %cst_23 : f32 to vector<8x96xf32>
    %66 = arith.addf %65, %64 : vector<8x96xf32>
    %67 = arith.divf %65, %66 : vector<8x96xf32>
    %68 = vector.extract_strided_slice %61 {offsets = [0, 96], sizes = [8, 32], strides = [1, 1]} : vector<8x128xf32> to vector<8x32xf32>
    %69 = math.tanh %68 : vector<8x32xf32>
    %70 = vector.extract_strided_slice %67 {offsets = [0, 0], sizes = [8, 32], strides = [1, 1]} : vector<8x96xf32> to vector<8x32xf32>
    %71 = vector.extract_strided_slice %67 {offsets = [0, 32], sizes = [8, 32], strides = [1, 1]} : vector<8x96xf32> to vector<8x32xf32>
    %72 = vector.extract_strided_slice %67 {offsets = [0, 64], sizes = [8, 32], strides = [1, 1]} : vector<8x96xf32> to vector<8x32xf32>
    %73 = arith.mulf %71, %33 : vector<8x32xf32>
    %74 = arith.mulf %70, %69 : vector<8x32xf32>
    %75 = arith.addf %73, %74 : vector<8x32xf32>
    %76 = math.tanh %75 : vector<8x32xf32>
    %77 = arith.mulf %72, %76 : vector<8x32xf32>
    %78 = arith.truncf %77 : vector<8x32xf32> to vector<8x32xbf16>
    %cst_24 = arith.constant dense<0.000000e+00> : vector<8x128xf32>
    %79 = tpu.matmul %78, %7, %cst_24 {dimension_numbers = #tpu.dot_dimension_numbers<[1], [0], [0], [1], [0, 0, 1, 1], [], []>} : vector<8x32xbf16>, vector<32x128xbf16>, vector<8x128xf32> -> vector<8x128xf32>
    %80 = arith.truncf %57 : vector<8x32xf32> to vector<8x32xbf16>
    %cst_25 = arith.constant dense<0.000000e+00> : vector<8x128xf32>
    %81 = tpu.matmul %80, %8, %cst_25 {dimension_numbers = #tpu.dot_dimension_numbers<[1], [0], [0], [1], [0, 0, 1, 1], [], []>} : vector<8x32xbf16>, vector<32x128xbf16>, vector<8x128xf32> -> vector<8x128xf32>
    %82 = arith.addf %79, %81 : vector<8x128xf32>
    %83 = arith.addf %82, %11 : vector<8x128xf32>
    %84 = vector.extract_strided_slice %83 {offsets = [0, 0], sizes = [8, 96], strides = [1, 1]} : vector<8x128xf32> to vector<8x96xf32>
    %85 = arith.negf %84 : vector<8x96xf32>
    %86 = math.exp %85 : vector<8x96xf32>
    %cst_26 = arith.constant 1.000000e+00 : f32
    %87 = vector.broadcast %cst_26 : f32 to vector<8x96xf32>
    %88 = arith.addf %87, %86 : vector<8x96xf32>
    %89 = arith.divf %87, %88 : vector<8x96xf32>
    %90 = vector.extract_strided_slice %83 {offsets = [0, 96], sizes = [8, 32], strides = [1, 1]} : vector<8x128xf32> to vector<8x32xf32>
    %91 = math.tanh %90 : vector<8x32xf32>
    %92 = vector.extract_strided_slice %89 {offsets = [0, 0], sizes = [8, 32], strides = [1, 1]} : vector<8x96xf32> to vector<8x32xf32>
    %93 = vector.extract_strided_slice %89 {offsets = [0, 32], sizes = [8, 32], strides = [1, 1]} : vector<8x96xf32> to vector<8x32xf32>
    %94 = vector.extract_strided_slice %89 {offsets = [0, 64], sizes = [8, 32], strides = [1, 1]} : vector<8x96xf32> to vector<8x32xf32>
    %95 = arith.mulf %93, %55 : vector<8x32xf32>
    %96 = arith.mulf %92, %91 : vector<8x32xf32>
    %97 = arith.addf %95, %96 : vector<8x32xf32>
    %98 = math.tanh %97 : vector<8x32xf32>
    %99 = arith.mulf %94, %98 : vector<8x32xf32>
    %100 = vector.extract_strided_slice %5 {offsets = [16, 0], sizes = [8, 128], strides = [1, 1]} : vector<64x128xf32> to vector<8x128xf32>
    %101 = arith.truncf %77 : vector<8x32xf32> to vector<8x32xbf16>
    %cst_27 = arith.constant dense<0.000000e+00> : vector<8x128xf32>
    %102 = tpu.matmul %101, %6, %cst_27 {dimension_numbers = #tpu.dot_dimension_numbers<[1], [0], [0], [1], [0, 0, 1, 1], [], []>} : vector<8x32xbf16>, vector<32x128xbf16>, vector<8x128xf32> -> vector<8x128xf32>
    %103 = arith.addf %100, %102 : vector<8x128xf32>
    %104 = vector.extract_strided_slice %103 {offsets = [0, 0], sizes = [8, 96], strides = [1, 1]} : vector<8x128xf32> to vector<8x96xf32>
    %105 = arith.negf %104 : vector<8x96xf32>
    %106 = math.exp %105 : vector<8x96xf32>
    %cst_28 = arith.constant 1.000000e+00 : f32
    %107 = vector.broadcast %cst_28 : f32 to vector<8x96xf32>
    %108 = arith.addf %107, %106 : vector<8x96xf32>
    %109 = arith.divf %107, %108 : vector<8x96xf32>
    %110 = vector.extract_strided_slice %103 {offsets = [0, 96], sizes = [8, 32], strides = [1, 1]} : vector<8x128xf32> to vector<8x32xf32>
    %111 = math.tanh %110 : vector<8x32xf32>
    %112 = vector.extract_strided_slice %109 {offsets = [0, 0], sizes = [8, 32], strides = [1, 1]} : vector<8x96xf32> to vector<8x32xf32>
    %113 = vector.extract_strided_slice %109 {offsets = [0, 32], sizes = [8, 32], strides = [1, 1]} : vector<8x96xf32> to vector<8x32xf32>
    %114 = vector.extract_strided_slice %109 {offsets = [0, 64], sizes = [8, 32], strides = [1, 1]} : vector<8x96xf32> to vector<8x32xf32>
    %115 = arith.mulf %113, %75 : vector<8x32xf32>
    %116 = arith.mulf %112, %111 : vector<8x32xf32>
    %117 = arith.addf %115, %116 : vector<8x32xf32>
    %118 = math.tanh %117 : vector<8x32xf32>
    %119 = arith.mulf %114, %118 : vector<8x32xf32>
    %120 = arith.truncf %119 : vector<8x32xf32> to vector<8x32xbf16>
    %cst_29 = arith.constant dense<0.000000e+00> : vector<8x128xf32>
    %121 = tpu.matmul %120, %7, %cst_29 {dimension_numbers = #tpu.dot_dimension_numbers<[1], [0], [0], [1], [0, 0, 1, 1], [], []>} : vector<8x32xbf16>, vector<32x128xbf16>, vector<8x128xf32> -> vector<8x128xf32>
    %122 = arith.truncf %99 : vector<8x32xf32> to vector<8x32xbf16>
    %cst_30 = arith.constant dense<0.000000e+00> : vector<8x128xf32>
    %123 = tpu.matmul %122, %8, %cst_30 {dimension_numbers = #tpu.dot_dimension_numbers<[1], [0], [0], [1], [0, 0, 1, 1], [], []>} : vector<8x32xbf16>, vector<32x128xbf16>, vector<8x128xf32> -> vector<8x128xf32>
    %124 = arith.addf %121, %123 : vector<8x128xf32>
    %125 = arith.addf %124, %11 : vector<8x128xf32>
    %126 = vector.extract_strided_slice %125 {offsets = [0, 0], sizes = [8, 96], strides = [1, 1]} : vector<8x128xf32> to vector<8x96xf32>
    %127 = arith.negf %126 : vector<8x96xf32>
    %128 = math.exp %127 : vector<8x96xf32>
    %cst_31 = arith.constant 1.000000e+00 : f32
    %129 = vector.broadcast %cst_31 : f32 to vector<8x96xf32>
    %130 = arith.addf %129, %128 : vector<8x96xf32>
    %131 = arith.divf %129, %130 : vector<8x96xf32>
    %132 = vector.extract_strided_slice %125 {offsets = [0, 96], sizes = [8, 32], strides = [1, 1]} : vector<8x128xf32> to vector<8x32xf32>
    %133 = math.tanh %132 : vector<8x32xf32>
    %134 = vector.extract_strided_slice %131 {offsets = [0, 0], sizes = [8, 32], strides = [1, 1]} : vector<8x96xf32> to vector<8x32xf32>
    %135 = vector.extract_strided_slice %131 {offsets = [0, 32], sizes = [8, 32], strides = [1, 1]} : vector<8x96xf32> to vector<8x32xf32>
    %136 = vector.extract_strided_slice %131 {offsets = [0, 64], sizes = [8, 32], strides = [1, 1]} : vector<8x96xf32> to vector<8x32xf32>
    %137 = arith.mulf %135, %97 : vector<8x32xf32>
    %138 = arith.mulf %134, %133 : vector<8x32xf32>
    %139 = arith.addf %137, %138 : vector<8x32xf32>
    %140 = math.tanh %139 : vector<8x32xf32>
    %141 = arith.mulf %136, %140 : vector<8x32xf32>
    %142 = vector.extract_strided_slice %5 {offsets = [24, 0], sizes = [8, 128], strides = [1, 1]} : vector<64x128xf32> to vector<8x128xf32>
    %143 = arith.truncf %119 : vector<8x32xf32> to vector<8x32xbf16>
    %cst_32 = arith.constant dense<0.000000e+00> : vector<8x128xf32>
    %144 = tpu.matmul %143, %6, %cst_32 {dimension_numbers = #tpu.dot_dimension_numbers<[1], [0], [0], [1], [0, 0, 1, 1], [], []>} : vector<8x32xbf16>, vector<32x128xbf16>, vector<8x128xf32> -> vector<8x128xf32>
    %145 = arith.addf %142, %144 : vector<8x128xf32>
    %146 = vector.extract_strided_slice %145 {offsets = [0, 0], sizes = [8, 96], strides = [1, 1]} : vector<8x128xf32> to vector<8x96xf32>
    %147 = arith.negf %146 : vector<8x96xf32>
    %148 = math.exp %147 : vector<8x96xf32>
    %cst_33 = arith.constant 1.000000e+00 : f32
    %149 = vector.broadcast %cst_33 : f32 to vector<8x96xf32>
    %150 = arith.addf %149, %148 : vector<8x96xf32>
    %151 = arith.divf %149, %150 : vector<8x96xf32>
    %152 = vector.extract_strided_slice %145 {offsets = [0, 96], sizes = [8, 32], strides = [1, 1]} : vector<8x128xf32> to vector<8x32xf32>
    %153 = math.tanh %152 : vector<8x32xf32>
    %154 = vector.extract_strided_slice %151 {offsets = [0, 0], sizes = [8, 32], strides = [1, 1]} : vector<8x96xf32> to vector<8x32xf32>
    %155 = vector.extract_strided_slice %151 {offsets = [0, 32], sizes = [8, 32], strides = [1, 1]} : vector<8x96xf32> to vector<8x32xf32>
    %156 = vector.extract_strided_slice %151 {offsets = [0, 64], sizes = [8, 32], strides = [1, 1]} : vector<8x96xf32> to vector<8x32xf32>
    %157 = arith.mulf %155, %117 : vector<8x32xf32>
    %158 = arith.mulf %154, %153 : vector<8x32xf32>
    %159 = arith.addf %157, %158 : vector<8x32xf32>
    %160 = math.tanh %159 : vector<8x32xf32>
    %161 = arith.mulf %156, %160 : vector<8x32xf32>
    %162 = arith.truncf %161 : vector<8x32xf32> to vector<8x32xbf16>
    %cst_34 = arith.constant dense<0.000000e+00> : vector<8x128xf32>
    %163 = tpu.matmul %162, %7, %cst_34 {dimension_numbers = #tpu.dot_dimension_numbers<[1], [0], [0], [1], [0, 0, 1, 1], [], []>} : vector<8x32xbf16>, vector<32x128xbf16>, vector<8x128xf32> -> vector<8x128xf32>
    %164 = arith.truncf %141 : vector<8x32xf32> to vector<8x32xbf16>
    %cst_35 = arith.constant dense<0.000000e+00> : vector<8x128xf32>
    %165 = tpu.matmul %164, %8, %cst_35 {dimension_numbers = #tpu.dot_dimension_numbers<[1], [0], [0], [1], [0, 0, 1, 1], [], []>} : vector<8x32xbf16>, vector<32x128xbf16>, vector<8x128xf32> -> vector<8x128xf32>
    %166 = arith.addf %163, %165 : vector<8x128xf32>
    %167 = arith.addf %166, %11 : vector<8x128xf32>
    %168 = vector.extract_strided_slice %167 {offsets = [0, 0], sizes = [8, 96], strides = [1, 1]} : vector<8x128xf32> to vector<8x96xf32>
    %169 = arith.negf %168 : vector<8x96xf32>
    %170 = math.exp %169 : vector<8x96xf32>
    %cst_36 = arith.constant 1.000000e+00 : f32
    %171 = vector.broadcast %cst_36 : f32 to vector<8x96xf32>
    %172 = arith.addf %171, %170 : vector<8x96xf32>
    %173 = arith.divf %171, %172 : vector<8x96xf32>
    %174 = vector.extract_strided_slice %167 {offsets = [0, 96], sizes = [8, 32], strides = [1, 1]} : vector<8x128xf32> to vector<8x32xf32>
    %175 = math.tanh %174 : vector<8x32xf32>
    %176 = vector.extract_strided_slice %173 {offsets = [0, 0], sizes = [8, 32], strides = [1, 1]} : vector<8x96xf32> to vector<8x32xf32>
    %177 = vector.extract_strided_slice %173 {offsets = [0, 32], sizes = [8, 32], strides = [1, 1]} : vector<8x96xf32> to vector<8x32xf32>
    %178 = vector.extract_strided_slice %173 {offsets = [0, 64], sizes = [8, 32], strides = [1, 1]} : vector<8x96xf32> to vector<8x32xf32>
    %179 = arith.mulf %177, %139 : vector<8x32xf32>
    %180 = arith.mulf %176, %175 : vector<8x32xf32>
    %181 = arith.addf %179, %180 : vector<8x32xf32>
    %182 = math.tanh %181 : vector<8x32xf32>
    %183 = arith.mulf %178, %182 : vector<8x32xf32>
    %184 = vector.extract_strided_slice %5 {offsets = [32, 0], sizes = [8, 128], strides = [1, 1]} : vector<64x128xf32> to vector<8x128xf32>
    %185 = arith.truncf %161 : vector<8x32xf32> to vector<8x32xbf16>
    %cst_37 = arith.constant dense<0.000000e+00> : vector<8x128xf32>
    %186 = tpu.matmul %185, %6, %cst_37 {dimension_numbers = #tpu.dot_dimension_numbers<[1], [0], [0], [1], [0, 0, 1, 1], [], []>} : vector<8x32xbf16>, vector<32x128xbf16>, vector<8x128xf32> -> vector<8x128xf32>
    %187 = arith.addf %184, %186 : vector<8x128xf32>
    %188 = vector.extract_strided_slice %187 {offsets = [0, 0], sizes = [8, 96], strides = [1, 1]} : vector<8x128xf32> to vector<8x96xf32>
    %189 = arith.negf %188 : vector<8x96xf32>
    %190 = math.exp %189 : vector<8x96xf32>
    %cst_38 = arith.constant 1.000000e+00 : f32
    %191 = vector.broadcast %cst_38 : f32 to vector<8x96xf32>
    %192 = arith.addf %191, %190 : vector<8x96xf32>
    %193 = arith.divf %191, %192 : vector<8x96xf32>
    %194 = vector.extract_strided_slice %187 {offsets = [0, 96], sizes = [8, 32], strides = [1, 1]} : vector<8x128xf32> to vector<8x32xf32>
    %195 = math.tanh %194 : vector<8x32xf32>
    %196 = vector.extract_strided_slice %193 {offsets = [0, 0], sizes = [8, 32], strides = [1, 1]} : vector<8x96xf32> to vector<8x32xf32>
    %197 = vector.extract_strided_slice %193 {offsets = [0, 32], sizes = [8, 32], strides = [1, 1]} : vector<8x96xf32> to vector<8x32xf32>
    %198 = vector.extract_strided_slice %193 {offsets = [0, 64], sizes = [8, 32], strides = [1, 1]} : vector<8x96xf32> to vector<8x32xf32>
    %199 = arith.mulf %197, %159 : vector<8x32xf32>
    %200 = arith.mulf %196, %195 : vector<8x32xf32>
    %201 = arith.addf %199, %200 : vector<8x32xf32>
    %202 = math.tanh %201 : vector<8x32xf32>
    %203 = arith.mulf %198, %202 : vector<8x32xf32>
    %204 = arith.truncf %203 : vector<8x32xf32> to vector<8x32xbf16>
    %cst_39 = arith.constant dense<0.000000e+00> : vector<8x128xf32>
    %205 = tpu.matmul %204, %7, %cst_39 {dimension_numbers = #tpu.dot_dimension_numbers<[1], [0], [0], [1], [0, 0, 1, 1], [], []>} : vector<8x32xbf16>, vector<32x128xbf16>, vector<8x128xf32> -> vector<8x128xf32>
    %206 = arith.truncf %183 : vector<8x32xf32> to vector<8x32xbf16>
    %cst_40 = arith.constant dense<0.000000e+00> : vector<8x128xf32>
    %207 = tpu.matmul %206, %8, %cst_40 {dimension_numbers = #tpu.dot_dimension_numbers<[1], [0], [0], [1], [0, 0, 1, 1], [], []>} : vector<8x32xbf16>, vector<32x128xbf16>, vector<8x128xf32> -> vector<8x128xf32>
    %208 = arith.addf %205, %207 : vector<8x128xf32>
    %209 = arith.addf %208, %11 : vector<8x128xf32>
    %210 = vector.extract_strided_slice %209 {offsets = [0, 0], sizes = [8, 96], strides = [1, 1]} : vector<8x128xf32> to vector<8x96xf32>
    %211 = arith.negf %210 : vector<8x96xf32>
    %212 = math.exp %211 : vector<8x96xf32>
    %cst_41 = arith.constant 1.000000e+00 : f32
    %213 = vector.broadcast %cst_41 : f32 to vector<8x96xf32>
    %214 = arith.addf %213, %212 : vector<8x96xf32>
    %215 = arith.divf %213, %214 : vector<8x96xf32>
    %216 = vector.extract_strided_slice %209 {offsets = [0, 96], sizes = [8, 32], strides = [1, 1]} : vector<8x128xf32> to vector<8x32xf32>
    %217 = math.tanh %216 : vector<8x32xf32>
    %218 = vector.extract_strided_slice %215 {offsets = [0, 0], sizes = [8, 32], strides = [1, 1]} : vector<8x96xf32> to vector<8x32xf32>
    %219 = vector.extract_strided_slice %215 {offsets = [0, 32], sizes = [8, 32], strides = [1, 1]} : vector<8x96xf32> to vector<8x32xf32>
    %220 = vector.extract_strided_slice %215 {offsets = [0, 64], sizes = [8, 32], strides = [1, 1]} : vector<8x96xf32> to vector<8x32xf32>
    %221 = arith.mulf %219, %181 : vector<8x32xf32>
    %222 = arith.mulf %218, %217 : vector<8x32xf32>
    %223 = arith.addf %221, %222 : vector<8x32xf32>
    %224 = math.tanh %223 : vector<8x32xf32>
    %225 = arith.mulf %220, %224 : vector<8x32xf32>
    %226 = vector.extract_strided_slice %5 {offsets = [40, 0], sizes = [8, 128], strides = [1, 1]} : vector<64x128xf32> to vector<8x128xf32>
    %227 = arith.truncf %203 : vector<8x32xf32> to vector<8x32xbf16>
    %cst_42 = arith.constant dense<0.000000e+00> : vector<8x128xf32>
    %228 = tpu.matmul %227, %6, %cst_42 {dimension_numbers = #tpu.dot_dimension_numbers<[1], [0], [0], [1], [0, 0, 1, 1], [], []>} : vector<8x32xbf16>, vector<32x128xbf16>, vector<8x128xf32> -> vector<8x128xf32>
    %229 = arith.addf %226, %228 : vector<8x128xf32>
    %230 = vector.extract_strided_slice %229 {offsets = [0, 0], sizes = [8, 96], strides = [1, 1]} : vector<8x128xf32> to vector<8x96xf32>
    %231 = arith.negf %230 : vector<8x96xf32>
    %232 = math.exp %231 : vector<8x96xf32>
    %cst_43 = arith.constant 1.000000e+00 : f32
    %233 = vector.broadcast %cst_43 : f32 to vector<8x96xf32>
    %234 = arith.addf %233, %232 : vector<8x96xf32>
    %235 = arith.divf %233, %234 : vector<8x96xf32>
    %236 = vector.extract_strided_slice %229 {offsets = [0, 96], sizes = [8, 32], strides = [1, 1]} : vector<8x128xf32> to vector<8x32xf32>
    %237 = math.tanh %236 : vector<8x32xf32>
    %238 = vector.extract_strided_slice %235 {offsets = [0, 0], sizes = [8, 32], strides = [1, 1]} : vector<8x96xf32> to vector<8x32xf32>
    %239 = vector.extract_strided_slice %235 {offsets = [0, 32], sizes = [8, 32], strides = [1, 1]} : vector<8x96xf32> to vector<8x32xf32>
    %240 = vector.extract_strided_slice %235 {offsets = [0, 64], sizes = [8, 32], strides = [1, 1]} : vector<8x96xf32> to vector<8x32xf32>
    %241 = arith.mulf %239, %201 : vector<8x32xf32>
    %242 = arith.mulf %238, %237 : vector<8x32xf32>
    %243 = arith.addf %241, %242 : vector<8x32xf32>
    %244 = math.tanh %243 : vector<8x32xf32>
    %245 = arith.mulf %240, %244 : vector<8x32xf32>
    %246 = arith.truncf %245 : vector<8x32xf32> to vector<8x32xbf16>
    %cst_44 = arith.constant dense<0.000000e+00> : vector<8x128xf32>
    %247 = tpu.matmul %246, %7, %cst_44 {dimension_numbers = #tpu.dot_dimension_numbers<[1], [0], [0], [1], [0, 0, 1, 1], [], []>} : vector<8x32xbf16>, vector<32x128xbf16>, vector<8x128xf32> -> vector<8x128xf32>
    %248 = arith.truncf %225 : vector<8x32xf32> to vector<8x32xbf16>
    %cst_45 = arith.constant dense<0.000000e+00> : vector<8x128xf32>
    %249 = tpu.matmul %248, %8, %cst_45 {dimension_numbers = #tpu.dot_dimension_numbers<[1], [0], [0], [1], [0, 0, 1, 1], [], []>} : vector<8x32xbf16>, vector<32x128xbf16>, vector<8x128xf32> -> vector<8x128xf32>
    %250 = arith.addf %247, %249 : vector<8x128xf32>
    %251 = arith.addf %250, %11 : vector<8x128xf32>
    %252 = vector.extract_strided_slice %251 {offsets = [0, 0], sizes = [8, 96], strides = [1, 1]} : vector<8x128xf32> to vector<8x96xf32>
    %253 = arith.negf %252 : vector<8x96xf32>
    %254 = math.exp %253 : vector<8x96xf32>
    %cst_46 = arith.constant 1.000000e+00 : f32
    %255 = vector.broadcast %cst_46 : f32 to vector<8x96xf32>
    %256 = arith.addf %255, %254 : vector<8x96xf32>
    %257 = arith.divf %255, %256 : vector<8x96xf32>
    %258 = vector.extract_strided_slice %251 {offsets = [0, 96], sizes = [8, 32], strides = [1, 1]} : vector<8x128xf32> to vector<8x32xf32>
    %259 = math.tanh %258 : vector<8x32xf32>
    %260 = vector.extract_strided_slice %257 {offsets = [0, 0], sizes = [8, 32], strides = [1, 1]} : vector<8x96xf32> to vector<8x32xf32>
    %261 = vector.extract_strided_slice %257 {offsets = [0, 32], sizes = [8, 32], strides = [1, 1]} : vector<8x96xf32> to vector<8x32xf32>
    %262 = vector.extract_strided_slice %257 {offsets = [0, 64], sizes = [8, 32], strides = [1, 1]} : vector<8x96xf32> to vector<8x32xf32>
    %263 = arith.mulf %261, %223 : vector<8x32xf32>
    %264 = arith.mulf %260, %259 : vector<8x32xf32>
    %265 = arith.addf %263, %264 : vector<8x32xf32>
    %266 = math.tanh %265 : vector<8x32xf32>
    %267 = arith.mulf %262, %266 : vector<8x32xf32>
    %268 = vector.extract_strided_slice %5 {offsets = [48, 0], sizes = [8, 128], strides = [1, 1]} : vector<64x128xf32> to vector<8x128xf32>
    %269 = arith.truncf %245 : vector<8x32xf32> to vector<8x32xbf16>
    %cst_47 = arith.constant dense<0.000000e+00> : vector<8x128xf32>
    %270 = tpu.matmul %269, %6, %cst_47 {dimension_numbers = #tpu.dot_dimension_numbers<[1], [0], [0], [1], [0, 0, 1, 1], [], []>} : vector<8x32xbf16>, vector<32x128xbf16>, vector<8x128xf32> -> vector<8x128xf32>
    %271 = arith.addf %268, %270 : vector<8x128xf32>
    %272 = vector.extract_strided_slice %271 {offsets = [0, 0], sizes = [8, 96], strides = [1, 1]} : vector<8x128xf32> to vector<8x96xf32>
    %273 = arith.negf %272 : vector<8x96xf32>
    %274 = math.exp %273 : vector<8x96xf32>
    %cst_48 = arith.constant 1.000000e+00 : f32
    %275 = vector.broadcast %cst_48 : f32 to vector<8x96xf32>
    %276 = arith.addf %275, %274 : vector<8x96xf32>
    %277 = arith.divf %275, %276 : vector<8x96xf32>
    %278 = vector.extract_strided_slice %271 {offsets = [0, 96], sizes = [8, 32], strides = [1, 1]} : vector<8x128xf32> to vector<8x32xf32>
    %279 = math.tanh %278 : vector<8x32xf32>
    %280 = vector.extract_strided_slice %277 {offsets = [0, 0], sizes = [8, 32], strides = [1, 1]} : vector<8x96xf32> to vector<8x32xf32>
    %281 = vector.extract_strided_slice %277 {offsets = [0, 32], sizes = [8, 32], strides = [1, 1]} : vector<8x96xf32> to vector<8x32xf32>
    %282 = vector.extract_strided_slice %277 {offsets = [0, 64], sizes = [8, 32], strides = [1, 1]} : vector<8x96xf32> to vector<8x32xf32>
    %283 = arith.mulf %281, %243 : vector<8x32xf32>
    %284 = arith.mulf %280, %279 : vector<8x32xf32>
    %285 = arith.addf %283, %284 : vector<8x32xf32>
    %286 = math.tanh %285 : vector<8x32xf32>
    %287 = arith.mulf %282, %286 : vector<8x32xf32>
    %288 = arith.truncf %287 : vector<8x32xf32> to vector<8x32xbf16>
    %cst_49 = arith.constant dense<0.000000e+00> : vector<8x128xf32>
    %289 = tpu.matmul %288, %7, %cst_49 {dimension_numbers = #tpu.dot_dimension_numbers<[1], [0], [0], [1], [0, 0, 1, 1], [], []>} : vector<8x32xbf16>, vector<32x128xbf16>, vector<8x128xf32> -> vector<8x128xf32>
    %290 = arith.truncf %267 : vector<8x32xf32> to vector<8x32xbf16>
    %cst_50 = arith.constant dense<0.000000e+00> : vector<8x128xf32>
    %291 = tpu.matmul %290, %8, %cst_50 {dimension_numbers = #tpu.dot_dimension_numbers<[1], [0], [0], [1], [0, 0, 1, 1], [], []>} : vector<8x32xbf16>, vector<32x128xbf16>, vector<8x128xf32> -> vector<8x128xf32>
    %292 = arith.addf %289, %291 : vector<8x128xf32>
    %293 = arith.addf %292, %11 : vector<8x128xf32>
    %294 = vector.extract_strided_slice %293 {offsets = [0, 0], sizes = [8, 96], strides = [1, 1]} : vector<8x128xf32> to vector<8x96xf32>
    %295 = arith.negf %294 : vector<8x96xf32>
    %296 = math.exp %295 : vector<8x96xf32>
    %cst_51 = arith.constant 1.000000e+00 : f32
    %297 = vector.broadcast %cst_51 : f32 to vector<8x96xf32>
    %298 = arith.addf %297, %296 : vector<8x96xf32>
    %299 = arith.divf %297, %298 : vector<8x96xf32>
    %300 = vector.extract_strided_slice %293 {offsets = [0, 96], sizes = [8, 32], strides = [1, 1]} : vector<8x128xf32> to vector<8x32xf32>
    %301 = math.tanh %300 : vector<8x32xf32>
    %302 = vector.extract_strided_slice %299 {offsets = [0, 0], sizes = [8, 32], strides = [1, 1]} : vector<8x96xf32> to vector<8x32xf32>
    %303 = vector.extract_strided_slice %299 {offsets = [0, 32], sizes = [8, 32], strides = [1, 1]} : vector<8x96xf32> to vector<8x32xf32>
    %304 = vector.extract_strided_slice %299 {offsets = [0, 64], sizes = [8, 32], strides = [1, 1]} : vector<8x96xf32> to vector<8x32xf32>
    %305 = arith.mulf %303, %265 : vector<8x32xf32>
    %306 = arith.mulf %302, %301 : vector<8x32xf32>
    %307 = arith.addf %305, %306 : vector<8x32xf32>
    %308 = math.tanh %307 : vector<8x32xf32>
    %309 = arith.mulf %304, %308 : vector<8x32xf32>
    %310 = vector.extract_strided_slice %5 {offsets = [56, 0], sizes = [8, 128], strides = [1, 1]} : vector<64x128xf32> to vector<8x128xf32>
    %311 = arith.truncf %287 : vector<8x32xf32> to vector<8x32xbf16>
    %cst_52 = arith.constant dense<0.000000e+00> : vector<8x128xf32>
    %312 = tpu.matmul %311, %6, %cst_52 {dimension_numbers = #tpu.dot_dimension_numbers<[1], [0], [0], [1], [0, 0, 1, 1], [], []>} : vector<8x32xbf16>, vector<32x128xbf16>, vector<8x128xf32> -> vector<8x128xf32>
    %313 = arith.addf %310, %312 : vector<8x128xf32>
    %314 = vector.extract_strided_slice %313 {offsets = [0, 0], sizes = [8, 96], strides = [1, 1]} : vector<8x128xf32> to vector<8x96xf32>
    %315 = arith.negf %314 : vector<8x96xf32>
    %316 = math.exp %315 : vector<8x96xf32>
    %cst_53 = arith.constant 1.000000e+00 : f32
    %317 = vector.broadcast %cst_53 : f32 to vector<8x96xf32>
    %318 = arith.addf %317, %316 : vector<8x96xf32>
    %319 = arith.divf %317, %318 : vector<8x96xf32>
    %320 = vector.extract_strided_slice %313 {offsets = [0, 96], sizes = [8, 32], strides = [1, 1]} : vector<8x128xf32> to vector<8x32xf32>
    %321 = math.tanh %320 : vector<8x32xf32>
    %322 = vector.extract_strided_slice %319 {offsets = [0, 0], sizes = [8, 32], strides = [1, 1]} : vector<8x96xf32> to vector<8x32xf32>
    %323 = vector.extract_strided_slice %319 {offsets = [0, 32], sizes = [8, 32], strides = [1, 1]} : vector<8x96xf32> to vector<8x32xf32>
    %324 = vector.extract_strided_slice %319 {offsets = [0, 64], sizes = [8, 32], strides = [1, 1]} : vector<8x96xf32> to vector<8x32xf32>
    %325 = arith.mulf %323, %285 : vector<8x32xf32>
    %326 = arith.mulf %322, %321 : vector<8x32xf32>
    %327 = arith.addf %325, %326 : vector<8x32xf32>
    %328 = math.tanh %327 : vector<8x32xf32>
    %329 = arith.mulf %324, %328 : vector<8x32xf32>
    %330 = arith.truncf %329 : vector<8x32xf32> to vector<8x32xbf16>
    %cst_54 = arith.constant dense<0.000000e+00> : vector<8x128xf32>
    %331 = tpu.matmul %330, %7, %cst_54 {dimension_numbers = #tpu.dot_dimension_numbers<[1], [0], [0], [1], [0, 0, 1, 1], [], []>} : vector<8x32xbf16>, vector<32x128xbf16>, vector<8x128xf32> -> vector<8x128xf32>
    %332 = arith.truncf %309 : vector<8x32xf32> to vector<8x32xbf16>
    %cst_55 = arith.constant dense<0.000000e+00> : vector<8x128xf32>
    %333 = tpu.matmul %332, %8, %cst_55 {dimension_numbers = #tpu.dot_dimension_numbers<[1], [0], [0], [1], [0, 0, 1, 1], [], []>} : vector<8x32xbf16>, vector<32x128xbf16>, vector<8x128xf32> -> vector<8x128xf32>
    %334 = arith.addf %331, %333 : vector<8x128xf32>
    %335 = arith.addf %334, %11 : vector<8x128xf32>
    %336 = vector.extract_strided_slice %335 {offsets = [0, 0], sizes = [8, 96], strides = [1, 1]} : vector<8x128xf32> to vector<8x96xf32>
    %337 = arith.negf %336 : vector<8x96xf32>
    %338 = math.exp %337 : vector<8x96xf32>
    %cst_56 = arith.constant 1.000000e+00 : f32
    %339 = vector.broadcast %cst_56 : f32 to vector<8x96xf32>
    %340 = arith.addf %339, %338 : vector<8x96xf32>
    %341 = arith.divf %339, %340 : vector<8x96xf32>
    %342 = vector.extract_strided_slice %335 {offsets = [0, 96], sizes = [8, 32], strides = [1, 1]} : vector<8x128xf32> to vector<8x32xf32>
    %343 = math.tanh %342 : vector<8x32xf32>
    %344 = vector.extract_strided_slice %341 {offsets = [0, 0], sizes = [8, 32], strides = [1, 1]} : vector<8x96xf32> to vector<8x32xf32>
    %345 = vector.extract_strided_slice %341 {offsets = [0, 32], sizes = [8, 32], strides = [1, 1]} : vector<8x96xf32> to vector<8x32xf32>
    %346 = vector.extract_strided_slice %341 {offsets = [0, 64], sizes = [8, 32], strides = [1, 1]} : vector<8x96xf32> to vector<8x32xf32>
    %347 = arith.mulf %345, %307 : vector<8x32xf32>
    %348 = arith.mulf %344, %343 : vector<8x32xf32>
    %349 = arith.addf %347, %348 : vector<8x32xf32>
    %350 = math.tanh %349 : vector<8x32xf32>
    %351 = arith.mulf %346, %350 : vector<8x32xf32>
    %352 = arith.truncf %351 : vector<8x32xf32> to vector<8x32xbf16>
    %c0_57 = arith.constant 0 : index
    %c0_58 = arith.constant 0 : index
    %353 = vector.load %arg7[%c0_57, %c0_58] : memref<32x32xbf16, #tpu.memory_space<vmem>>, vector<32x32xbf16>
    %cst_59 = arith.constant dense<0.000000e+00> : vector<8x32xf32>
    %354 = tpu.matmul %352, %353, %cst_59 {dimension_numbers = #tpu.dot_dimension_numbers<[1], [0], [0], [1], [0, 0, 1, 1], [], []>} : vector<8x32xbf16>, vector<32x32xbf16>, vector<8x32xf32> -> vector<8x32xf32>
    %c0_60 = arith.constant 0 : index
    %c0_61 = arith.constant 0 : index
    %355 = vector.load %arg8[%c0_60, %c0_61] : memref<1x32xf32, #tpu.memory_space<vmem>>, vector<1x32xf32>
    %356 = vector.broadcast %355 : vector<1x32xf32> to vector<8x32xf32>
    %357 = arith.addf %354, %356 : vector<8x32xf32>
    %cst_62 = arith.constant 0.000000e+00 : f32
    %358 = vector.broadcast %cst_62 : f32 to vector<8x32xf32>
    %359 = arith.maximumf %357, %358 : vector<8x32xf32>
    %360 = arith.truncf %359 : vector<8x32xf32> to vector<8x32xbf16>
    %c0_63 = arith.constant 0 : index
    %c0_64 = arith.constant 0 : index
    %361 = vector.load %arg9[%c0_63, %c0_64] : memref<32x16xbf16, #tpu.memory_space<vmem>>, vector<32x16xbf16>
    %cst_65 = arith.constant dense<0.000000e+00> : vector<8x16xf32>
    %362 = tpu.matmul %360, %361, %cst_65 {dimension_numbers = #tpu.dot_dimension_numbers<[1], [0], [0], [1], [0, 0, 1, 1], [], []>} : vector<8x32xbf16>, vector<32x16xbf16>, vector<8x16xf32> -> vector<8x16xf32>
    %c0_66 = arith.constant 0 : index
    %c0_67 = arith.constant 0 : index
    %363 = vector.load %arg10[%c0_66, %c0_67] : memref<1x16xf32, #tpu.memory_space<vmem>>, vector<1x16xf32>
    %364 = vector.broadcast %363 : vector<1x16xf32> to vector<8x16xf32>
    %365 = arith.addf %362, %364 : vector<8x16xf32>
    %c0_68 = arith.constant 0 : index
    %c0_69 = arith.constant 0 : index
    %366 = vector.load %arg11[%c0_68, %c0_69] : memref<8x8xbf16, #tpu.memory_space<vmem>>, vector<8x8xbf16>
    %367 = arith.truncf %365 : vector<8x16xf32> to vector<8x16xbf16>
    %c0_70 = arith.constant 0 : index
    %c0_71 = arith.constant 0 : index
    %368 = vector.load %arg14[%c0_70, %c0_71] : memref<16x32xbf16, #tpu.memory_space<vmem>>, vector<16x32xbf16>
    %cst_72 = arith.constant dense<0.000000e+00> : vector<8x32xf32>
    %369 = tpu.matmul %367, %368, %cst_72 {dimension_numbers = #tpu.dot_dimension_numbers<[1], [0], [0], [1], [0, 0, 1, 1], [], []>} : vector<8x16xbf16>, vector<16x32xbf16>, vector<8x32xf32> -> vector<8x32xf32>
    %370 = arith.truncf %369 : vector<8x32xf32> to vector<8x32xbf16>
    %cst_73 = arith.constant dense<0.000000e+00> : vector<8x32xf32>
    %371 = tpu.matmul %366, %370, %cst_73 {dimension_numbers = #tpu.dot_dimension_numbers<[1], [0], [0], [1], [0, 0, 1, 1], [], []>} : vector<8x8xbf16>, vector<8x32xbf16>, vector<8x32xf32> -> vector<8x32xf32>
    %c0_74 = arith.constant 0 : index
    %c0_75 = arith.constant 0 : index
    %372 = vector.load %arg15[%c0_74, %c0_75] : memref<1x32xf32, #tpu.memory_space<vmem>>, vector<1x32xf32>
    %373 = vector.broadcast %372 : vector<1x32xf32> to vector<8x32xf32>
    %374 = arith.addf %371, %373 : vector<8x32xf32>
    %cst_76 = arith.constant 0.000000e+00 : f32
    %375 = vector.broadcast %cst_76 : f32 to vector<8x32xf32>
    %376 = arith.maximumf %374, %375 : vector<8x32xf32>
    %377 = arith.truncf %376 : vector<8x32xf32> to vector<8x32xbf16>
    %c0_77 = arith.constant 0 : index
    %c0_78 = arith.constant 0 : index
    %378 = vector.load %arg16[%c0_77, %c0_78] : memref<32x32xbf16, #tpu.memory_space<vmem>>, vector<32x32xbf16>
    %cst_79 = arith.constant dense<0.000000e+00> : vector<8x32xf32>
    %379 = tpu.matmul %377, %378, %cst_79 {dimension_numbers = #tpu.dot_dimension_numbers<[1], [0], [0], [1], [0, 0, 1, 1], [], []>} : vector<8x32xbf16>, vector<32x32xbf16>, vector<8x32xf32> -> vector<8x32xf32>
    %380 = arith.truncf %379 : vector<8x32xf32> to vector<8x32xbf16>
    %cst_80 = arith.constant dense<0.000000e+00> : vector<8x32xf32>
    %381 = tpu.matmul %366, %380, %cst_80 {dimension_numbers = #tpu.dot_dimension_numbers<[1], [0], [0], [1], [0, 0, 1, 1], [], []>} : vector<8x8xbf16>, vector<8x32xbf16>, vector<8x32xf32> -> vector<8x32xf32>
    %c0_81 = arith.constant 0 : index
    %c0_82 = arith.constant 0 : index
    %382 = vector.load %arg17[%c0_81, %c0_82] : memref<1x32xf32, #tpu.memory_space<vmem>>, vector<1x32xf32>
    %383 = vector.broadcast %382 : vector<1x32xf32> to vector<8x32xf32>
    %384 = arith.addf %381, %383 : vector<8x32xf32>
    %cst_83 = arith.constant 0.000000e+00 : f32
    %385 = vector.broadcast %cst_83 : f32 to vector<8x32xf32>
    %386 = arith.maximumf %384, %385 : vector<8x32xf32>
    %387 = arith.truncf %386 : vector<8x32xf32> to vector<8x32xbf16>
    %c0_84 = arith.constant 0 : index
    %c0_85 = arith.constant 0 : index
    %388 = vector.load %arg18[%c0_84, %c0_85] : memref<32x32xbf16, #tpu.memory_space<vmem>>, vector<32x32xbf16>
    %cst_86 = arith.constant dense<0.000000e+00> : vector<8x32xf32>
    %389 = tpu.matmul %387, %388, %cst_86 {dimension_numbers = #tpu.dot_dimension_numbers<[1], [0], [0], [1], [0, 0, 1, 1], [], []>} : vector<8x32xbf16>, vector<32x32xbf16>, vector<8x32xf32> -> vector<8x32xf32>
    %390 = arith.truncf %389 : vector<8x32xf32> to vector<8x32xbf16>
    %cst_87 = arith.constant dense<0.000000e+00> : vector<8x32xf32>
    %391 = tpu.matmul %366, %390, %cst_87 {dimension_numbers = #tpu.dot_dimension_numbers<[1], [0], [0], [1], [0, 0, 1, 1], [], []>} : vector<8x8xbf16>, vector<8x32xbf16>, vector<8x32xf32> -> vector<8x32xf32>
    %c0_88 = arith.constant 0 : index
    %c0_89 = arith.constant 0 : index
    %392 = vector.load %arg19[%c0_88, %c0_89] : memref<1x32xf32, #tpu.memory_space<vmem>>, vector<1x32xf32>
    %393 = vector.broadcast %392 : vector<1x32xf32> to vector<8x32xf32>
    %394 = arith.addf %391, %393 : vector<8x32xf32>
    %cst_90 = arith.constant 0.000000e+00 : f32
    %395 = vector.broadcast %cst_90 : f32 to vector<8x32xf32>
    %396 = arith.maximumf %394, %395 : vector<8x32xf32>
    %397 = arith.truncf %396 : vector<8x32xf32> to vector<8x32xbf16>
    %c0_91 = arith.constant 0 : index
    %c0_92 = arith.constant 0 : index
    %398 = vector.load %arg12[%c0_91, %c0_92] : memref<16x8xbf16, #tpu.memory_space<vmem>>, vector<16x8xbf16>
    %cst_93 = arith.constant dense<0.000000e+00> : vector<16x32xf32>
    %399 = tpu.matmul %398, %397, %cst_93 {dimension_numbers = #tpu.dot_dimension_numbers<[1], [0], [0], [1], [0, 0, 1, 1], [], []>} : vector<16x8xbf16>, vector<8x32xbf16>, vector<16x32xf32> -> vector<16x32xf32>
    %c0_94 = arith.constant 0 : index
    %c0_95 = arith.constant 0 : index
    %400 = vector.load %arg13[%c0_94, %c0_95] : memref<16x8xbf16, #tpu.memory_space<vmem>>, vector<16x8xbf16>
    %cst_96 = arith.constant dense<0.000000e+00> : vector<16x32xf32>
    %401 = tpu.matmul %400, %397, %cst_96 {dimension_numbers = #tpu.dot_dimension_numbers<[1], [0], [0], [1], [0, 0, 1, 1], [], []>} : vector<16x8xbf16>, vector<8x32xbf16>, vector<16x32xf32> -> vector<16x32xf32>
    %402 = arith.truncf %399 : vector<16x32xf32> to vector<16x32xbf16>
    %c0_97 = arith.constant 0 : index
    %c0_98 = arith.constant 0 : index
    %403 = vector.load %arg20[%c0_97, %c0_98] : memref<32x32xbf16, #tpu.memory_space<vmem>>, vector<32x32xbf16>
    %cst_99 = arith.constant dense<0.000000e+00> : vector<16x32xf32>
    %404 = tpu.matmul %402, %403, %cst_99 {dimension_numbers = #tpu.dot_dimension_numbers<[1], [0], [0], [1], [0, 0, 1, 1], [], []>} : vector<16x32xbf16>, vector<32x32xbf16>, vector<16x32xf32> -> vector<16x32xf32>
    %405 = arith.truncf %401 : vector<16x32xf32> to vector<16x32xbf16>
    %c0_100 = arith.constant 0 : index
    %c0_101 = arith.constant 0 : index
    %406 = vector.load %arg21[%c0_100, %c0_101] : memref<32x32xbf16, #tpu.memory_space<vmem>>, vector<32x32xbf16>
    %cst_102 = arith.constant dense<0.000000e+00> : vector<16x32xf32>
    %407 = tpu.matmul %405, %406, %cst_102 {dimension_numbers = #tpu.dot_dimension_numbers<[1], [0], [0], [1], [0, 0, 1, 1], [], []>} : vector<16x32xbf16>, vector<32x32xbf16>, vector<16x32xf32> -> vector<16x32xf32>
    %408 = arith.addf %404, %407 : vector<16x32xf32>
    %c0_103 = arith.constant 0 : index
    %c0_104 = arith.constant 0 : index
    %409 = vector.load %arg22[%c0_103, %c0_104] : memref<1x32xf32, #tpu.memory_space<vmem>>, vector<1x32xf32>
    %410 = vector.broadcast %409 : vector<1x32xf32> to vector<16x32xf32>
    %411 = arith.addf %408, %410 : vector<16x32xf32>
    %cst_105 = arith.constant 0.000000e+00 : f32
    %412 = vector.broadcast %cst_105 : f32 to vector<16x32xf32>
    %413 = arith.maximumf %411, %412 : vector<16x32xf32>
    %414 = arith.truncf %413 : vector<16x32xf32> to vector<16x32xbf16>
    %c0_106 = arith.constant 0 : index
    %c0_107 = arith.constant 0 : index
    %415 = vector.load %arg23[%c0_106, %c0_107] : memref<32x16xbf16, #tpu.memory_space<vmem>>, vector<32x16xbf16>
    %cst_108 = arith.constant dense<0.000000e+00> : vector<16x16xf32>
    %416 = tpu.matmul %414, %415, %cst_108 {dimension_numbers = #tpu.dot_dimension_numbers<[1], [0], [0], [1], [0, 0, 1, 1], [], []>} : vector<16x32xbf16>, vector<32x16xbf16>, vector<16x16xf32> -> vector<16x16xf32>
    %c0_109 = arith.constant 0 : index
    %c0_110 = arith.constant 0 : index
    %417 = vector.load %arg24[%c0_109, %c0_110] : memref<1x16xf32, #tpu.memory_space<vmem>>, vector<1x16xf32>
    %418 = vector.broadcast %417 : vector<1x16xf32> to vector<16x16xf32>
    %419 = arith.addf %416, %418 : vector<16x16xf32>
    %cst_111 = arith.constant 0.000000e+00 : f32
    %420 = vector.broadcast %cst_111 : f32 to vector<16x16xf32>
    %421 = arith.maximumf %419, %420 : vector<16x16xf32>
    %422 = arith.truncf %421 : vector<16x16xf32> to vector<16x16xbf16>
    %c0_112 = arith.constant 0 : index
    %c0_113 = arith.constant 0 : index
    %423 = vector.load %arg25[%c0_112, %c0_113] : memref<16x1xbf16, #tpu.memory_space<vmem>>, vector<16x1xbf16>
    %cst_114 = arith.constant dense<0.000000e+00> : vector<16x1xf32>
    %424 = tpu.matmul %422, %423, %cst_114 {dimension_numbers = #tpu.dot_dimension_numbers<[1], [0], [0], [1], [0, 0, 1, 1], [], []>} : vector<16x16xbf16>, vector<16x1xbf16>, vector<16x1xf32> -> vector<16x1xf32>
    %c0_115 = arith.constant 0 : index
    %c0_116 = arith.constant 0 : index
    %425 = vector.load %arg26[%c0_115, %c0_116] : memref<1x1xf32, #tpu.memory_space<vmem>>, vector<1x1xf32>
    %426 = vector.broadcast %425 : vector<1x1xf32> to vector<16x1xf32>
    %427 = arith.addf %424, %426 : vector<16x1xf32>
    %428 = arith.negf %427 : vector<16x1xf32>
    %429 = math.exp %428 : vector<16x1xf32>
    %cst_117 = arith.constant 1.000000e+00 : f32
    %430 = vector.broadcast %cst_117 : f32 to vector<16x1xf32>
    %431 = arith.addf %430, %429 : vector<16x1xf32>
    %432 = arith.divf %430, %431 : vector<16x1xf32>
    %433 = arith.truncf %396 : vector<8x32xf32> to vector<8x32xbf16>
    %c0_118 = arith.constant 0 : index
    %c0_119 = arith.constant 0 : index
    %434 = vector.load %arg27[%c0_118, %c0_119] : memref<32x16xbf16, #tpu.memory_space<vmem>>, vector<32x16xbf16>
    %cst_120 = arith.constant dense<0.000000e+00> : vector<8x16xf32>
    %435 = tpu.matmul %433, %434, %cst_120 {dimension_numbers = #tpu.dot_dimension_numbers<[1], [0], [0], [1], [0, 0, 1, 1], [], []>} : vector<8x32xbf16>, vector<32x16xbf16>, vector<8x16xf32> -> vector<8x16xf32>
    %c0_121 = arith.constant 0 : index
    %c0_122 = arith.constant 0 : index
    %436 = vector.load %arg28[%c0_121, %c0_122] : memref<1x16xf32, #tpu.memory_space<vmem>>, vector<1x16xf32>
    %437 = vector.broadcast %436 : vector<1x16xf32> to vector<8x16xf32>
    %438 = arith.addf %435, %437 : vector<8x16xf32>
    %cst_123 = arith.constant 0.000000e+00 : f32
    %439 = vector.broadcast %cst_123 : f32 to vector<8x16xf32>
    %440 = arith.maximumf %438, %439 : vector<8x16xf32>
    %441 = arith.truncf %440 : vector<8x16xf32> to vector<8x16xbf16>
    %c0_124 = arith.constant 0 : index
    %c0_125 = arith.constant 0 : index
    %442 = vector.load %arg29[%c0_124, %c0_125] : memref<16x4xbf16, #tpu.memory_space<vmem>>, vector<16x4xbf16>
    %cst_126 = arith.constant dense<0.000000e+00> : vector<8x4xf32>
    %443 = tpu.matmul %441, %442, %cst_126 {dimension_numbers = #tpu.dot_dimension_numbers<[1], [0], [0], [1], [0, 0, 1, 1], [], []>} : vector<8x16xbf16>, vector<16x4xbf16>, vector<8x4xf32> -> vector<8x4xf32>
    %c0_127 = arith.constant 0 : index
    %c0_128 = arith.constant 0 : index
    %444 = vector.load %arg30[%c0_127, %c0_128] : memref<1x4xf32, #tpu.memory_space<vmem>>, vector<1x4xf32>
    %445 = vector.broadcast %444 : vector<1x4xf32> to vector<8x4xf32>
    %446 = arith.addf %443, %445 : vector<8x4xf32>
    %447 = arith.truncf %396 : vector<8x32xf32> to vector<8x32xbf16>
    %c0_129 = arith.constant 0 : index
    %c0_130 = arith.constant 0 : index
    %448 = vector.load %arg31[%c0_129, %c0_130] : memref<32x16xbf16, #tpu.memory_space<vmem>>, vector<32x16xbf16>
    %cst_131 = arith.constant dense<0.000000e+00> : vector<8x16xf32>
    %449 = tpu.matmul %447, %448, %cst_131 {dimension_numbers = #tpu.dot_dimension_numbers<[1], [0], [0], [1], [0, 0, 1, 1], [], []>} : vector<8x32xbf16>, vector<32x16xbf16>, vector<8x16xf32> -> vector<8x16xf32>
    %c0_132 = arith.constant 0 : index
    %c0_133 = arith.constant 0 : index
    %450 = vector.load %arg32[%c0_132, %c0_133] : memref<1x16xf32, #tpu.memory_space<vmem>>, vector<1x16xf32>
    %451 = vector.broadcast %450 : vector<1x16xf32> to vector<8x16xf32>
    %452 = arith.addf %449, %451 : vector<8x16xf32>
    %cst_134 = arith.constant 0.000000e+00 : f32
    %453 = vector.broadcast %cst_134 : f32 to vector<8x16xf32>
    %454 = arith.maximumf %452, %453 : vector<8x16xf32>
    %455 = arith.truncf %454 : vector<8x16xf32> to vector<8x16xbf16>
    %c0_135 = arith.constant 0 : index
    %c0_136 = arith.constant 0 : index
    %456 = vector.load %arg33[%c0_135, %c0_136] : memref<16x1xbf16, #tpu.memory_space<vmem>>, vector<16x1xbf16>
    %cst_137 = arith.constant dense<0.000000e+00> : vector<8x1xf32>
    %457 = tpu.matmul %455, %456, %cst_137 {dimension_numbers = #tpu.dot_dimension_numbers<[1], [0], [0], [1], [0, 0, 1, 1], [], []>} : vector<8x16xbf16>, vector<16x1xbf16>, vector<8x1xf32> -> vector<8x1xf32>
    %c0_138 = arith.constant 0 : index
    %c0_139 = arith.constant 0 : index
    %458 = vector.load %arg34[%c0_138, %c0_139] : memref<1x1xf32, #tpu.memory_space<vmem>>, vector<1x1xf32>
    %459 = vector.broadcast %458 : vector<1x1xf32> to vector<8x1xf32>
    %460 = arith.addf %457, %459 : vector<8x1xf32>
    %cst_140 = arith.constant 0.000000e+00 : f32
    %461 = vector.broadcast %cst_140 : f32 to vector<8x1xf32>
    %462 = arith.maximumf %460, %461 : vector<8x1xf32>
    %463 = vector.broadcast %cst_140 : f32 to vector<8x1xf32>
    %464 = arith.subf %460, %463 : vector<8x1xf32>
    %465 = arith.cmpf one, %464, %464 : vector<8x1xf32>
    %466 = vector.broadcast %cst_140 : f32 to vector<8x1xf32>
    %467 = arith.addf %460, %466 : vector<8x1xf32>
    %468 = math.absf %464 : vector<8x1xf32>
    %cst_141 = arith.constant 0.000000e+00 : f32
    %469 = vector.broadcast %cst_141 : f32 to vector<8x1xf32>
    %470 = arith.subf %469, %468 : vector<8x1xf32>
    %471 = math.exp %470 : vector<8x1xf32>
    %472 = math.log1p %471 : vector<8x1xf32>
    %473 = arith.addf %462, %472 : vector<8x1xf32>
    %474 = arith.select %465, %467, %473 : vector<8x1xi1>, vector<8x1xf32>
    %cst_142 = arith.constant 0.000000e+00 : f32
    %475 = vector.broadcast %cst_142 : f32 to vector<8x91xf32>
    %476 = tpu.concatenate %396, %446, %474, %475 in 1 : vector<8x32xf32>, vector<8x4xf32>, vector<8x1xf32>, vector<8x91xf32> -> vector<8x128xf32>
    %c0_143 = arith.constant 0 : index
    %c0_144 = arith.constant 0 : index
    %477 = vector.load %arg35[%c0_143, %c0_144] : memref<8x128xf32, #tpu.memory_space<vmem>>, vector<8x128xf32>
    tpu.vector_store %arg35[%c0_143, %c0_144], %476 {strides = array<i32>} : memref<8x128xf32, #tpu.memory_space<vmem>>, vector<8x128xf32>,
    %cst_145 = arith.constant 0.000000e+00 : f32
    %478 = vector.broadcast %cst_145 : f32 to vector<16x127xf32>
    %479 = tpu.concatenate %432, %478 in 1 : vector<16x1xf32>, vector<16x127xf32> -> vector<16x128xf32>
    %c0_146 = arith.constant 0 : index
    %c0_147 = arith.constant 0 : index
    %480 = vector.load %arg36[%c0_146, %c0_147] : memref<16x128xf32, #tpu.memory_space<vmem>>, vector<16x128xf32>
    tpu.vector_store %arg36[%c0_146, %c0_147], %479 {strides = array<i32>} : memref<16x128xf32, #tpu.memory_space<vmem>>, vector<16x128xf32>,
    return
  }
}

</mosaic_0001>

<bundles_post_ra>
// kernel: track_gnn_forward.1
= control target key start
LH: loop header
LB: loop body
LE: loop exit
PB: predicated region body
PF: predicated region fallthrough
CT: control target
= control target key end

     0   :  { %s3760_s3 = smov 1   ;;  %v3761_v0 = vmov 0.0   ;;  %s3762_s7 = smov 2   ;;  %vm3763_vm0 = vmmov 0   ;;  %vm203_vm1 = vcmask 1043456   ;;  %vm190_vm2 = vcmask 64512   ;;  %s4382_s0 = inlined_call_operand.smem [shape: u32[37], index: -1, kind: input, shape index: {}] }
   0x1   :  { %s2941_s6 = sld [smem:[%s4382_s0 + %s3760_s3]]   ;;  %3219 = vmatprep.subr.bf16.mxu1 %v3761_v0  ;;  %3223 = vmatprep.mubr.msk.bf16.mxu1 %vm3763_vm0, %v3761_v0  ;;  %v3764_v7 = vmov 0   ;;  %s3765_s14 = smov 3   ;;  %vm303_vm3 = vcmask 261120   ;;  %vm1944_vm4 = vcmask 130048   ;;  %vm2928_vm5 = vcmask 7168  }
   0x2   :  { %s3812_s10 = sld [smem:[%s4382_s0 + %s3762_s7]]   ;;  %s3766_s18 = smov 32   ;;  %vm2923_vm8 = vcmask 293888   ;;  %vm2925_vm9 = vcmask 302080  }
   0x3   :  { %s3819_s13 = sld [smem:[%s4382_s0]]   ;;  %s3767_s19 = smov 5  }
   0x4   :  { %s3843_s17 = sld [smem:[%s4382_s0 + %s3765_s14]]   ;;  %s3768_s23 = smov 4  }
   0x5   :  { %s3865_s22 = sld [smem:[%s4382_s0 + %s3767_s19]]   ;;  %s3769_s27 = smov 64  }
   0x6   :  { %s3870_s26 = sld [smem:[%s4382_s0 + %s3768_s23]]   ;;  %s3770_s28 = smov 6  }
   0x7   :  { %v162_v1 = vld [vmem:[%s2941_s6] sm:$0xf]  ;;  %s3929_s1 = sld [smem:[%s4382_s0 + %s3770_s28]]   ;;  %s3771_s2 = smov 7  }
   0x8   :  { %3537 = vmatprep.subr.msk.bf16.mxu0 %vm203_vm1, %v162_v1  ;;  %v205_v2 = vsel %vm203_vm1, %v162_v1, 0  ;;  %v3824_v3 = vld [vmem:[%s3812_s10] sm:$0xff]   ;;  %v3833_v6 = vld [vmem:[%s3812_s10 + $0x8] sm:$0xff]   ;;  %s2947_s5 = sld [smem:[%s4382_s0 + %s3771_s2]]   ;;  %s3772_s6 = smov 9  }
   0x9   :  { %3210 = vmatpush3.bf16.msra.mxu0 %v205_v2  ;;  %v3579_v4 = vld [vmem:[%s3819_s13] sm:$0xff]   ;;  %3220 = vmatpush3.bf16.msra.mxu1 %v3824_v3  ;;  %v3580_v5 = vld [vmem:[%s3819_s13 + $0x8] sm:$0xff]   ;;  %v3583_v29 = vld [vmem:[%s3819_s13 + $0x10] sm:$0xff]   ;;  %s2949_s9 = sld [smem:[%s4382_s0 + %s3772_s6]]   ;;  %s3774_s14 = smov 14  }
   0xa   :  { %3235 = vmatprep.subr.bf16.mxu0 %v3761_v0  ;;  %3211 = vmatprep.mubr.msk.bf16.mxu0 %vm190_vm2, %v3579_v4  ;;  %v3846_v8 = vld [vmem:[%s3843_s17] ss:$0 sm:$0xff]  ;;  %v3585_v30 = vld [vmem:[%s3819_s13 + $0x18] sm:$0xff]   ;;  %s3775_s19 = smov 10   ;;  %s3776_s23 = smov 11  }
   0xb   :  { %3221 = vmatprep.subr.bf16.mxu1 %v3761_v0  ;;  %v3877_v31 = vld [vmem:[%s3865_s22] sm:$0xff]   ;;  %v3880_v33 = vld [vmem:[%s3865_s22 + $0x8] sm:$0xff]  }
   0xc   :  { %3212 = vmatmul.mubr.msk.bf16.vlgmr.msra.gmra.mrb[0].mxu0 %vm190_vm2, %v3580_v5  ;;  %v3885_v34 = vld [vmem:[%s3870_s26] sm:$0xff]   ;;  %v3890_v35 = vld [vmem:[%s3870_s26 + $0x8] sm:$0xff]  }
   0xd   :  { %3222 = vmatpush3.bf16.msra.mxu1 %v3833_v6  ;;  %3215 = vmatprep.mubr.msk.bf16.mxu0 %vm190_vm2, %v3583_v29  ;;  %v3934_v49 = vld [vmem:[%s3929_s1] ss:$0 sm:$0xff] }
   0xe   :  { %3227 = vmatprep.subr.bf16.mxu1 %v3761_v0  ;;  %3236 = vmatpush3.bf16.msra.mxu0 %v3885_v34 }
   0xf   :  { %3237 = vmatprep.subr.bf16.mxu0 %v3761_v0 }
  0x10   :  { %3224 = vmatmul.mubr.bf16.vlgmr.msra.gmra.mrb[0].mxu1 %v3764_v7 }
  0x11   :  { %3231 = vmatprep.mubr.msk.bf16.mxu1 %vm3763_vm0, %v3761_v0  ;;  %3228 = vmatpush3.bf16.msra.mxu1 %v3877_v31 }
  0x12   :  { %3229 = vmatprep.subr.bf16.mxu1 %v3761_v0  ;;  %3238 = vmatpush3.bf16.msra.mxu0 %v3890_v35 }
  0x13   :  { %3251 = vmatprep.subr.bf16.mxu0 %v3761_v0 }
  0x14   :  { %3216 = vmatmul.mubr.msk.bf16.gmra.mrb[4].mxu0 %vm190_vm2, %v3585_v30 }
  0x15   :  { %3239 = vmatprep.mubr.msk.bf16.mxu0 %vm3763_vm0, %v3761_v0  ;;  %3230 = vmatpush3.bf16.msra.mxu1 %v3880_v33 }
  0x16   :  { %3243 = vmatprep.subr.bf16.mxu1 %v3761_v0 }
  0x18   :  { %3232 = vmatmul.mubr.bf16.vlgmr.msra.gmra.mrb[4].mxu1 %v3764_v7 }
  0x19   :  { %3244 = vmatpush3.bf16.msra.mxu1 %v3824_v3  ;;  %3247 = vmatprep.mubr.msk.bf16.mxu1 %vm3763_vm0, %v3761_v0 }
  0x1a   :  { %3245 = vmatprep.subr.bf16.mxu1 %v3761_v0 }
  0x1d   :  { %3246 = vmatpush3.bf16.msra.mxu1 %v3833_v6 }
  0x1e   :  { %3259 = vmatprep.subr.bf16.mxu1 %v3761_v0 }
  0xdf   :  { %v3848_v9 = vpop.f32.mrb[0].mxu0 }
  0xe0   :  { %v241_v10 = vpop.f32.mrb[1].mxu0 }
  0xe1   :  { %v242_v11 = vadd.f32 %v3846_v8, %v241_v10  ;;  %v3851_v12 = vpop.f32.mrb[2].mxu0 }
  0xe2   :  { %v3853_v13 = vpop.f32.mrb[3].mxu0 }
  0xe3   :  { %v341_v14 = vpop.f32.mrb[0].mxu1  ;;  %v245_v48 = vadd.f32 %v3846_v8, %v3853_v13 }
  0xe4   :  { %v347_v15 = vadd.f32 %v341_v14, %v242_v11  ;;  %v3225_v16 = vpop.f32.mrb[1].mxu1 }
  0xe5   :  { %v344_v17 = vpop.f32.mrb[2].mxu1 }
  0xe6   :  { %3612 = vtanh.f32 %v347_v15  ;;  %v3226_v18 = vpop.f32.mrb[3].mxu1  ;;  %v2989_v20 = vmul.f32 -1.442695, %v347_v15 }
  0xe7   :  { %v3904_v39 = vpop.f32.mrb[4].mxu0 }
  0xe8   :  { %3614 = vpow2.f32 %v2989_v20  ;;  %v3906_v40 = vpop.f32.mrb[5].mxu0 }
  0xe9   :  { %v3908_v41 = vpop.f32.mrb[6].mxu0 }
  0xea   :  { %v3910_v42 = vpop.f32.mrb[7].mxu0 }
  0xeb   :  { %v419_v43 = vpop.f32.mrb[4].mxu1 }
  0xec   :  { %v3233_v44 = vpop.f32.mrb[5].mxu1 }
  0xed   :  { %v422_v45 = vpop.f32.mrb[6].mxu1 }
  0xee   :  { %v3234_v46 = vpop.f32.mrb[7].mxu1 }
  0xf0   :  { %v3613_v19 = vpop.eup %3612 }
  0xf1   :  { %357 = vrot.lane.b32.xlu0 %v3613_v19, %s3766_s18 }
  0xf2   :  { %v3615_v21 = vpop.eup %3614 }
  0xf3   :  { %v351_v22 = vadd.f32 1.0, %v3615_v21 }
  0xf5   :  { %3616 = vrcp.f32 %v351_v22 }
  0xff   :  { %v3617_v23 = vpop.eup %3616 }
 0x100   :  { %v355_v26 = vmul.f32 0.0, %v3617_v23 }
 0x163   :  { %v358_v24 = vpop.permute.xlu0 %357 }
 0x164   :  { %v360_v25 = vmul.f32 %v3617_v23, %v358_v24 }
 0x166   :  { %362 = vrot.lane.b32.xlu0 %v360_v25, %s3766_s18 }
 0x1d8   :  { %v363_v27 = vpop.permute.xlu0 %362 }
 0x1d9   :  { %v3857_v28 = vadd.f32 %v363_v27, %v355_v26 }
 0x1db   :  { %3618 = vtanh.f32 %v3857_v28 }
 0x1e5   :  { %v3619_v32 = vpop.eup %3618 }
 0x1e6   :  { %368 = vrot.lane.b32.xlu1 %v3619_v32, %s3766_s18 }
 0x258   :  { %v369_v36 = vpop.permute.xlu1 %368 }
 0x259   :  { %v371_v37 = vmul.f32 %v3617_v23, %v369_v36 }
 0x25b   :  { %v372_v38 = vpack.c.bf16 %v371_v37, %v371_v37 }
 0x25d   :  { %426 = vrot.lane.b32.xlu1 %v372_v38, %s3769_s27 }
 0x2cf   :  { %v427_v47 = vpop.permute.xlu1 %426 }
 0x2d0   :  { %3240 = vmatmul.mubr.msk.bf16.vlgmr.msra.gmra.mrb[8].mxu0 %vm303_vm3, %v427_v47  ;;  %3248 = vmatmul.mubr.msk.bf16.vlgmr.msra.gmra.mrb[8].mxu1 %vm303_vm3, %v427_v47 }
 0x2d1   :  { %3260 = vmatpush3.bf16.msra.mxu1 %v3885_v34  ;;  %3252 = vmatpush3.bf16.msra.mxu0 %v3877_v31 }
 0x2d2   :  { %3261 = vmatprep.subr.bf16.mxu1 %v3761_v0  ;;  %3253 = vmatprep.subr.bf16.mxu0 %v3761_v0 }
 0x2d3   :  { %3263 = vmatprep.mubr.msk.bf16.mxu1 %vm3763_vm0, %v3761_v0  ;;  %3255 = vmatprep.mubr.msk.bf16.mxu0 %vm3763_vm0, %v3761_v0 }
 0x2d5   :  { %3262 = vmatpush3.bf16.msra.mxu1 %v3890_v35  ;;  %3254 = vmatpush3.bf16.msra.mxu0 %v3880_v33 }
 0x2d6   :  { %3267 = vmatprep.subr.bf16.mxu0 %v3761_v0  ;;  %3275 = vmatprep.subr.bf16.mxu1 %v3761_v0 }
 0x3a3   :  { %v477_v50 = vpop.f32.mrb[8].mxu0  ;;  %v542_v51 = vpop.f32.mrb[8].mxu1 }
 0x3a4   :  { %v478_v52 = vadd.f32 %v477_v50, %v419_v43  ;;  %v548_v53 = vadd.f32 %v542_v51, %v245_v48  ;;  %v3241_v54 = vpop.f32.mrb[9].mxu0  ;;  %v3249_v55 = vpop.f32.mrb[9].mxu1 }
 0x3a5   :  { %v480_v56 = vpop.f32.mrb[10].mxu0  ;;  %v545_v57 = vpop.f32.mrb[10].mxu1 }
 0x3a6   :  { %v483_v58 = vadd.f32 %v3934_v49, %v478_v52  ;;  %3620 = vtanh.f32 %v548_v53  ;;  %v3242_v59 = vpop.f32.mrb[11].mxu0  ;;  %v3250_v60 = vpop.f32.mrb[11].mxu1  ;;  %v2997_v63 = vmul.f32 -1.442695, %v548_v53  ;;  %v250_v52 = vadd.f32 %v3848_v9, %v3846_v8 }
 0x3a8   :  { %3622 = vtanh.f32 %v483_v58  ;;  %v2995_v1 = vmul.f32 -1.442695, %v483_v58 }
 0x3a9   :  { %3624 = vpow2.f32 %v2997_v63 }
 0x3aa   :  { %3626 = vpow2.f32 %v2995_v1 }
 0x3b0   :  { %v3621_v61 = vpop.eup %3620 }
 0x3b1   :  { %558 = vrot.lane.b32.xlu1 %v3621_v61, %s3766_s18 }
 0x3b2   :  { %v3623_v62 = vpop.eup %3622 }
 0x3b3   :  { %493 = vrot.lane.b32.xlu0 %v3623_v62, %s3766_s18  ;;  %v3625_v2 = vpop.eup %3624 }
 0x3b4   :  { %v3627_v4 = vpop.eup %3626  ;;  %v552_v5 = vadd.f32 1.0, %v3625_v2 }
 0x3b5   :  { %v487_v7 = vadd.f32 1.0, %v3627_v4 }
 0x3b6   :  { %3628 = vrcp.f32 %v552_v5 }
 0x3b7   :  { %3630 = vrcp.f32 %v487_v7 }
 0x3c0   :  { %v3629_v10 = vpop.eup %3628 }
 0x3c1   :  { %v3631_v14 = vpop.eup %3630  ;;  %v556_v17 = vmul.f32 %v3629_v10, %v3857_v28 }
 0x3c2   :  { %v491_v20 = vmul.f32 0.0, %v3631_v14 }
 0x423   :  { %v559_v11 = vpop.permute.xlu1 %558 }
 0x424   :  { %v561_v13 = vmul.f32 %v3629_v10, %v559_v11 }
 0x425   :  { %v494_v15 = vpop.permute.xlu0 %493 }
 0x426   :  { %v496_v16 = vmul.f32 %v3631_v14, %v494_v15  ;;  %563 = vrot.lane.b32.xlu1 %v561_v13, %s3766_s18 }
 0x428   :  { %498 = vrot.lane.b32.xlu0 %v496_v16, %s3766_s18 }
 0x498   :  { %v564_v18 = vpop.permute.xlu1 %563 }
 0x499   :  { %v3942_v19 = vadd.f32 %v564_v18, %v556_v17 }
 0x49a   :  { %v499_v21 = vpop.permute.xlu0 %498 }
 0x49b   :  { %3632 = vtanh.f32 %v3942_v19  ;;  %v3945_v22 = vadd.f32 %v499_v21, %v491_v20 }
 0x49d   :  { %3634 = vtanh.f32 %v3945_v22 }
 0x4a5   :  { %v3633_v23 = vpop.eup %3632 }
 0x4a6   :  { %569 = vrot.lane.b32.xlu1 %v3633_v23, %s3766_s18 }
 0x4a7   :  { %v3635_v24 = vpop.eup %3634 }
 0x4a8   :  { %504 = vrot.lane.b32.xlu0 %v3635_v24, %s3766_s18 }
 0x518   :  { %v570_v25 = vpop.permute.xlu1 %569 }
 0x519   :  { %v572_v26 = vmul.f32 %v3629_v10, %v570_v25 }
 0x51a   :  { %v505_v27 = vpop.permute.xlu0 %504 }
 0x51b   :  { %v573_v28 = vpack.c.bf16 %v572_v26, %v572_v26  ;;  %v507_v29 = vmul.f32 %v3631_v14, %v505_v27 }
 0x51d   :  { %v574_v30 = vpack.c.bf16 %v507_v29, %v507_v29  ;;  %622 = vrot.lane.b32.xlu1 %v573_v28, %s3769_s27 }
 0x51f   :  { %576 = vrot.lane.b32.xlu0 %v574_v30, %s3769_s27 }
 0x58f   :  { %v623_v32 = vpop.permute.xlu1 %622 }
 0x590   :  { %3264 = vmatmul.mubr.msk.bf16.vlgmr.msra.gmra.mrb[12].mxu1 %vm303_vm3, %v623_v32 }
 0x591   :  { %v577_v36 = vpop.permute.xlu0 %576  ;;  %3276 = vmatpush3.bf16.msra.mxu1 %v3877_v31  ;;  %3279 = vmatprep.mubr.msk.bf16.mxu1 %vm3763_vm0, %v3761_v0 }
 0x592   :  { %3256 = vmatmul.mubr.msk.bf16.vlgmr.msra.gmra.mrb[12].mxu0 %vm303_vm3, %v577_v36  ;;  %3277 = vmatprep.subr.bf16.mxu1 %v3761_v0 }
 0x593   :  { %3268 = vmatpush3.bf16.msra.mxu0 %v3824_v3  ;;  %3271 = vmatprep.mubr.msk.bf16.mxu0 %vm3763_vm0, %v3761_v0 }
 0x594   :  { %3269 = vmatprep.subr.bf16.mxu0 %v3761_v0 }
 0x595   :  { %3278 = vmatpush3.bf16.msra.mxu1 %v3880_v33 }
 0x596   :  { %3291 = vmatprep.subr.bf16.mxu1 %v3761_v0 }
 0x597   :  { %3270 = vmatpush3.bf16.msra.mxu0 %v3833_v6 }
 0x598   :  { %3283 = vmatprep.subr.bf16.mxu0 %v3761_v0 }
 0x59a   :  { %3272 = vmatmul.mubr.msk.bf16.vlgmr.msra.gmra.mrb[16].mxu0 %vm303_vm3, %v623_v32 }
 0x59b   :  { %3284 = vmatpush3.bf16.msra.mxu0 %v3885_v34  ;;  %3287 = vmatprep.mubr.msk.bf16.mxu0 %vm3763_vm0, %v3761_v0 }
 0x59c   :  { %3285 = vmatprep.subr.bf16.mxu0 %v3761_v0 }
 0x59f   :  { %3286 = vmatpush3.bf16.msra.mxu0 %v3890_v35 }
 0x5a0   :  { %3299 = vmatprep.subr.bf16.mxu0 %v3761_v0 }
 0x663   :  { %v661_v37 = vpop.f32.mrb[12].mxu1 }
 0x664   :  { %v3265_v38 = vpop.f32.mrb[13].mxu1 }
 0x665   :  { %v615_v43 = vpop.f32.mrb[12].mxu0  ;;  %v664_v44 = vpop.f32.mrb[14].mxu1  ;;  %v253_v38 = vadd.f32 %v3851_v12, %v3846_v8 }
 0x666   :  { %v662_v45 = vadd.f32 %v661_v37, %v615_v43  ;;  %v3257_v46 = vpop.f32.mrb[13].mxu0  ;;  %v3266_v47 = vpop.f32.mrb[15].mxu1 }
 0x667   :  { %v618_v48 = vpop.f32.mrb[14].mxu0 }
 0x668   :  { %v667_v50 = vadd.f32 %v3934_v49, %v662_v45  ;;  %v3258_v51 = vpop.f32.mrb[15].mxu0 }
 0x66a   :  { %3636 = vtanh.f32 %v667_v50  ;;  %v3000_v60 = vmul.f32 -1.442695, %v667_v50 }
 0x66d   :  { %v726_v53 = vpop.f32.mrb[16].mxu0 }
 0x66e   :  { %v732_v54 = vadd.f32 %v726_v53, %v250_v52  ;;  %v3273_v55 = vpop.f32.mrb[17].mxu0 }
 0x66f   :  { %v729_v56 = vpop.f32.mrb[18].mxu0 }
 0x670   :  { %3638 = vtanh.f32 %v732_v54  ;;  %v3274_v57 = vpop.f32.mrb[19].mxu0  ;;  %v3002_v61 = vmul.f32 -1.442695, %v732_v54 }
 0x671   :  { %3640 = vpow2.f32 %v3000_v60 }
 0x672   :  { %3642 = vpow2.f32 %v3002_v61 }
 0x674   :  { %v3637_v58 = vpop.eup %3636 }
 0x675   :  { %677 = vrot.lane.b32.xlu0 %v3637_v58, %s3766_s18 }
 0x67a   :  { %v3639_v59 = vpop.eup %3638 }
 0x67b   :  { %742 = vrot.lane.b32.xlu1 %v3639_v59, %s3766_s18  ;;  %v3641_v62 = vpop.eup %3640 }
 0x67c   :  { %v671_v63 = vadd.f32 1.0, %v3641_v62  ;;  %v3643_v1 = vpop.eup %3642 }
 0x67d   :  { %v736_v9 = vadd.f32 1.0, %v3643_v1 }
 0x67e   :  { %3644 = vrcp.f32 %v671_v63 }
 0x67f   :  { %3646 = vrcp.f32 %v736_v9 }
 0x688   :  { %v3645_v2 = vpop.eup %3644 }
 0x689   :  { %v3647_v7 = vpop.eup %3646  ;;  %v675_v13 = vmul.f32 %v3645_v2, %v3945_v22 }
 0x68a   :  { %v740_v16 = vmul.f32 %v3647_v7, %v3942_v19 }
 0x6e7   :  { %v678_v4 = vpop.permute.xlu0 %677 }
 0x6e8   :  { %v680_v5 = vmul.f32 %v3645_v2, %v678_v4 }
 0x6ea   :  { %682 = vrot.lane.b32.xlu0 %v680_v5, %s3766_s18 }
 0x6ed   :  { %v743_v10 = vpop.permute.xlu1 %742 }
 0x6ee   :  { %v745_v11 = vmul.f32 %v3647_v7, %v743_v10 }
 0x6f0   :  { %747 = vrot.lane.b32.xlu1 %v745_v11, %s3766_s18 }
 0x75c   :  { %v683_v14 = vpop.permute.xlu0 %682 }
 0x75d   :  { %v3981_v15 = vadd.f32 %v683_v14, %v675_v13 }
 0x75f   :  { %3648 = vtanh.f32 %v3981_v15 }
 0x762   :  { %v748_v17 = vpop.permute.xlu1 %747 }
 0x763   :  { %v3985_v18 = vadd.f32 %v748_v17, %v740_v16 }
 0x765   :  { %3650 = vtanh.f32 %v3985_v18 }
 0x769   :  { %v3649_v20 = vpop.eup %3648 }
 0x76a   :  { %688 = vrot.lane.b32.xlu0 %v3649_v20, %s3766_s18 }
 0x76f   :  { %v3651_v21 = vpop.eup %3650 }
 0x770   :  { %753 = vrot.lane.b32.xlu1 %v3651_v21, %s3766_s18 }
 0x7dc   :  { %v689_v23 = vpop.permute.xlu0 %688 }
 0x7dd   :  { %v691_v22 = vmul.f32 %v3645_v2, %v689_v23 }
 0x7df   :  { %v758_v24 = vpack.c.bf16 %v691_v22, %v691_v22 }
 0x7e1   :  { %760 = vrot.lane.b32.xlu0 %v758_v24, %s3769_s27 }
 0x7e2   :  { %v754_v25 = vpop.permute.xlu1 %753 }
 0x7e3   :  { %v756_v26 = vmul.f32 %v3647_v7, %v754_v25 }
 0x7e5   :  { %v757_v27 = vpack.c.bf16 %v756_v26, %v756_v26 }
 0x7e7   :  { %806 = vrot.lane.b32.xlu1 %v757_v27, %s3769_s27 }
 0x853   :  { %v761_v19 = vpop.permute.xlu0 %760 }
 0x854   :  { %3280 = vmatmul.mubr.msk.bf16.vlgmr.msra.gmra.mrb[16].mxu1 %vm303_vm3, %v761_v19 }
 0x855   :  { %3292 = vmatpush3.bf16.msra.mxu1 %v3824_v3  ;;  %3295 = vmatprep.mubr.msk.bf16.mxu1 %vm3763_vm0, %v3761_v0 }
 0x856   :  { %3293 = vmatprep.subr.bf16.mxu1 %v3761_v0 }
 0x859   :  { %3294 = vmatpush3.bf16.msra.mxu1 %v3833_v6  ;;  %v807_v28 = vpop.permute.xlu1 %806 }
 0x85a   :  { %3288 = vmatmul.mubr.msk.bf16.vlgmr.msra.gmra.mrb[20].mxu0 %vm303_vm3, %v807_v28  ;;  %3307 = vmatprep.subr.bf16.mxu1 %v3761_v0 }
 0x85b   :  { %3300 = vmatpush3.bf16.msra.mxu0 %v3877_v31  ;;  %3303 = vmatprep.mubr.msk.bf16.mxu0 %vm3763_vm0, %v3761_v0 }
 0x85c   :  { %3296 = vmatmul.mubr.msk.bf16.vlgmr.msra.gmra.mrb[20].mxu1 %vm303_vm3, %v807_v28  ;;  %3301 = vmatprep.subr.bf16.mxu0 %v3761_v0 }
 0x85d   :  { %3308 = vmatpush3.bf16.msra.mxu1 %v3885_v34  ;;  %3311 = vmatprep.mubr.msk.bf16.mxu1 %vm3763_vm0, %v3761_v0 }
 0x85e   :  { %3309 = vmatprep.subr.bf16.mxu1 %v3761_v0 }
 0x85f   :  { %3302 = vmatpush3.bf16.msra.mxu0 %v3880_v33 }
 0x860   :  { %3315 = vmatprep.subr.bf16.mxu0 %v3761_v0 }
 0x861   :  { %3310 = vmatpush3.bf16.msra.mxu1 %v3890_v35 }
 0x862   :  { %3323 = vmatprep.subr.bf16.mxu1 %v3761_v0 }
 0x927   :  { %v799_v29 = vpop.f32.mrb[16].mxu1 }
 0x928   :  { %v3281_v30 = vpop.f32.mrb[17].mxu1 }
 0x929   :  { %v802_v32 = vpop.f32.mrb[18].mxu1 }
 0x92a   :  { %v3282_v36 = vpop.f32.mrb[19].mxu1 }
 0x92d   :  { %v845_v37 = vpop.f32.mrb[20].mxu0 }
 0x92e   :  { %v846_v43 = vadd.f32 %v845_v37, %v799_v29  ;;  %v3289_v44 = vpop.f32.mrb[21].mxu0 }
 0x92f   :  { %v848_v45 = vpop.f32.mrb[22].mxu0  ;;  %v910_v46 = vpop.f32.mrb[20].mxu1 }
 0x930   :  { %v851_v47 = vadd.f32 %v3934_v49, %v846_v43  ;;  %v916_v48 = vadd.f32 %v910_v46, %v253_v38  ;;  %v3290_v50 = vpop.f32.mrb[23].mxu0  ;;  %v3297_v51 = vpop.f32.mrb[21].mxu1  ;;  %v258_v38 = vadd.f32 %v3846_v8, %v3906_v40 }
 0x931   :  { %v913_v52 = vpop.f32.mrb[22].mxu1 }
 0x932   :  { %3652 = vtanh.f32 %v851_v47  ;;  %v3298_v53 = vpop.f32.mrb[23].mxu1  ;;  %v3005_v12 = vmul.f32 -1.442695, %v851_v47  ;;  %v3007_v56 = vmul.f32 -1.442695, %v916_v48 }
 0x933   :  { %3654 = vtanh.f32 %v916_v48 }
 0x934   :  { %3656 = vpow2.f32 %v3005_v12 }
 0x935   :  { %3658 = vpow2.f32 %v3007_v56 }
 0x93c   :  { %v3653_v54 = vpop.eup %3652 }
 0x93d   :  { %v3655_v55 = vpop.eup %3654  ;;  %861 = vrot.lane.b32.xlu0 %v3653_v54, %s3766_s18 }
 0x93e   :  { %926 = vrot.lane.b32.xlu1 %v3655_v55, %s3766_s18  ;;  %v3657_v57 = vpop.eup %3656 }
 0x93f   :  { %v3659_v58 = vpop.eup %3658  ;;  %v855_v59 = vadd.f32 1.0, %v3657_v57 }
 0x940   :  { %v920_v60 = vadd.f32 1.0, %v3659_v58 }
 0x941   :  { %3660 = vrcp.f32 %v855_v59 }
 0x942   :  { %3662 = vrcp.f32 %v920_v60 }
 0x94b   :  { %v3661_v61 = vpop.eup %3660 }
 0x94c   :  { %v3663_v63 = vpop.eup %3662  ;;  %v859_v4 = vmul.f32 %v3661_v61, %v3981_v15 }
 0x94d   :  { %v924_v5 = vmul.f32 %v3663_v63, %v3985_v18 }
 0x9af   :  { %v862_v62 = vpop.permute.xlu0 %861 }
 0x9b0   :  { %v927_v1 = vpop.permute.xlu1 %926  ;;  %v864_v9 = vmul.f32 %v3661_v61, %v862_v62 }
 0x9b1   :  { %v929_v2 = vmul.f32 %v3663_v63, %v927_v1 }
 0x9b2   :  { %866 = vrot.lane.b32.xlu0 %v864_v9, %s3766_s18 }
 0x9b3   :  { %931 = vrot.lane.b32.xlu1 %v929_v2, %s3766_s18 }
 0xa24   :  { %v867_v7 = vpop.permute.xlu0 %866 }
 0xa25   :  { %v932_v10 = vpop.permute.xlu1 %931  ;;  %v4022_v11 = vadd.f32 %v867_v7, %v859_v4 }
 0xa26   :  { %v4024_v13 = vadd.f32 %v932_v10, %v924_v5 }
 0xa27   :  { %3664 = vtanh.f32 %v4022_v11 }
 0xa28   :  { %3666 = vtanh.f32 %v4024_v13 }
 0xa31   :  { %v3665_v14 = vpop.eup %3664 }
 0xa32   :  { %v3667_v16 = vpop.eup %3666  ;;  %872 = vrot.lane.b32.xlu0 %v3665_v14, %s3766_s18 }
 0xa33   :  { %937 = vrot.lane.b32.xlu1 %v3667_v16, %s3766_s18 }
 0xaa4   :  { %v873_v17 = vpop.permute.xlu0 %872 }
 0xaa5   :  { %v938_v15 = vpop.permute.xlu1 %937  ;;  %v875_v20 = vmul.f32 %v3661_v61, %v873_v17 }
 0xaa6   :  { %v940_v18 = vmul.f32 %v3663_v63, %v938_v15 }
 0xaa7   :  { %v942_v21 = vpack.c.bf16 %v875_v20, %v875_v20 }
 0xaa8   :  { %v941_v23 = vpack.c.bf16 %v940_v18, %v940_v18 }
 0xaa9   :  { %944 = vrot.lane.b32.xlu0 %v942_v21, %s3769_s27 }
 0xaaa   :  { %990 = vrot.lane.b32.xlu1 %v941_v23, %s3769_s27 }
 0xb1b   :  { %v945_v22 = vpop.permute.xlu0 %944 }
 0xb1c   :  { %v991_v24 = vpop.permute.xlu1 %990  ;;  %3304 = vmatmul.mubr.msk.bf16.vlgmr.msra.gmra.mrb[24].mxu0 %vm303_vm3, %v945_v22 }
 0xb1d   :  { %3312 = vmatmul.mubr.msk.bf16.vlgmr.msra.gmra.mrb[24].mxu1 %vm303_vm3, %v991_v24  ;;  %3316 = vmatpush3.bf16.msra.mxu0 %v3824_v3 }
 0xb1e   :  { %3317 = vmatprep.subr.bf16.mxu0 %v3761_v0  ;;  %3319 = vmatprep.mubr.msk.bf16.mxu0 %vm3763_vm0, %v3761_v0 }
 0xb1f   :  { %3324 = vmatpush3.bf16.msra.mxu1 %v3877_v31  ;;  %3327 = vmatprep.mubr.msk.bf16.mxu1 %vm3763_vm0, %v3761_v0 }
 0xb20   :  { %3325 = vmatprep.subr.bf16.mxu1 %v3761_v0 }
 0xb21   :  { %3318 = vmatpush3.bf16.msra.mxu0 %v3833_v6 }
 0xb22   :  { %3331 = vmatprep.subr.bf16.mxu0 %v3761_v0 }
 0xb23   :  { %3326 = vmatpush3.bf16.msra.mxu1 %v3880_v33 }
 0xb24   :  { %3320 = vmatmul.mubr.msk.bf16.vlgmr.msra.gmra.mrb[28].mxu0 %vm303_vm3, %v991_v24  ;;  %3339 = vmatprep.subr.bf16.mxu1 %v3761_v0 }
 0xb25   :  { %3332 = vmatpush3.bf16.msra.mxu0 %v3885_v34  ;;  %3335 = vmatprep.mubr.msk.bf16.mxu0 %vm3763_vm0, %v3761_v0 }
 0xb26   :  { %3333 = vmatprep.subr.bf16.mxu0 %v3761_v0 }
 0xb29   :  { %3334 = vmatpush3.bf16.msra.mxu0 %v3890_v35 }
 0xb2a   :  { %3347 = vmatprep.subr.bf16.mxu0 %v3761_v0 }
 0xbef   :  { %v983_v25 = vpop.f32.mrb[24].mxu0 }
 0xbf0   :  { %v1029_v26 = vpop.f32.mrb[24].mxu1  ;;  %v3305_v27 = vpop.f32.mrb[25].mxu0 }
 0xbf1   :  { %v1030_v19 = vadd.f32 %v1029_v26, %v983_v25  ;;  %v3313_v28 = vpop.f32.mrb[25].mxu1  ;;  %v986_v29 = vpop.f32.mrb[26].mxu0  ;;  %v261_v26 = vadd.f32 %v3846_v8, %v3910_v42 }
 0xbf2   :  { %v1032_v30 = vpop.f32.mrb[26].mxu1  ;;  %v3306_v32 = vpop.f32.mrb[27].mxu0 }
 0xbf3   :  { %v1035_v36 = vadd.f32 %v3934_v49, %v1030_v19  ;;  %v3314_v37 = vpop.f32.mrb[27].mxu1 }
 0xbf5   :  { %3668 = vtanh.f32 %v1035_v36  ;;  %v3010_v51 = vmul.f32 -1.442695, %v1035_v36 }
 0xbf7   :  { %v1094_v43 = vpop.f32.mrb[28].mxu0 }
 0xbf8   :  { %v1100_v44 = vadd.f32 %v1094_v43, %v258_v38  ;;  %v3321_v45 = vpop.f32.mrb[29].mxu0 }
 0xbf9   :  { %v1097_v46 = vpop.f32.mrb[30].mxu0 }
 0xbfa   :  { %3670 = vtanh.f32 %v1100_v44  ;;  %v3322_v47 = vpop.f32.mrb[31].mxu0  ;;  %v3012_v52 = vmul.f32 -1.442695, %v1100_v44 }
 0xbfb   :  { %3672 = vpow2.f32 %v3010_v51 }
 0xbfc   :  { %3674 = vpow2.f32 %v3012_v52 }
 0xbff   :  { %v3669_v48 = vpop.eup %3668 }
 0xc00   :  { %1045 = vrot.lane.b32.xlu0 %v3669_v48, %s3766_s18 }
 0xc04   :  { %v3671_v50 = vpop.eup %3670 }
 0xc05   :  { %1110 = vrot.lane.b32.xlu1 %v3671_v50, %s3766_s18  ;;  %v3673_v53 = vpop.eup %3672 }
 0xc06   :  { %v1039_v54 = vadd.f32 1.0, %v3673_v53  ;;  %v3675_v55 = vpop.eup %3674 }
 0xc07   :  { %v1104_v40 = vadd.f32 1.0, %v3675_v55 }
 0xc08   :  { %3676 = vrcp.f32 %v1039_v54 }
 0xc09   :  { %3678 = vrcp.f32 %v1104_v40 }
 0xc12   :  { %v3677_v12 = vpop.eup %3676 }
 0xc13   :  { %v3679_v58 = vpop.eup %3678  ;;  %v1043_v61 = vmul.f32 %v3677_v12, %v4022_v11 }
 0xc14   :  { %v1108_v1 = vmul.f32 %v3679_v58, %v4024_v13 }
 0xc72   :  { %v1046_v56 = vpop.permute.xlu0 %1045 }
 0xc73   :  { %v1048_v57 = vmul.f32 %v3677_v12, %v1046_v56 }
 0xc75   :  { %1050 = vrot.lane.b32.xlu0 %v1048_v57, %s3766_s18 }
 0xc77   :  { %v1111_v59 = vpop.permute.xlu1 %1110 }
 0xc78   :  { %v1113_v60 = vmul.f32 %v3679_v58, %v1111_v59 }
 0xc7a   :  { %1115 = vrot.lane.b32.xlu1 %v1113_v60, %s3766_s18 }
 0xce7   :  { %v1051_v62 = vpop.permute.xlu0 %1050 }
 0xce8   :  { %v4061_v63 = vadd.f32 %v1051_v62, %v1043_v61 }
 0xcea   :  { %3680 = vtanh.f32 %v4061_v63 }
 0xcec   :  { %v1116_v9 = vpop.permute.xlu1 %1115 }
 0xced   :  { %v4065_v2 = vadd.f32 %v1116_v9, %v1108_v1 }
 0xcef   :  { %3682 = vtanh.f32 %v4065_v2 }
 0xcf4   :  { %v3681_v4 = vpop.eup %3680 }
 0xcf5   :  { %1056 = vrot.lane.b32.xlu0 %v3681_v4, %s3766_s18 }
 0xcf9   :  { %v3683_v5 = vpop.eup %3682 }
 0xcfa   :  { %1121 = vrot.lane.b32.xlu1 %v3683_v5, %s3766_s18 }
 0xd67   :  { %v1057_v7 = vpop.permute.xlu0 %1056 }
 0xd68   :  { %v1059_v10 = vmul.f32 %v3677_v12, %v1057_v7 }
 0xd6a   :  { %v1126_v11 = vpack.c.bf16 %v1059_v10, %v1059_v10 }
 0xd6c   :  { %1128 = vrot.lane.b32.xlu0 %v1126_v11, %s3769_s27  ;;  %v1122_v14 = vpop.permute.xlu1 %1121 }
 0xd6d   :  { %v1124_v16 = vmul.f32 %v3679_v58, %v1122_v14 }
 0xd6f   :  { %v1125_v17 = vpack.c.bf16 %v1124_v16, %v1124_v16 }
 0xd71   :  { %1174 = vrot.lane.b32.xlu1 %v1125_v17, %s3769_s27 }
 0xdde   :  { %v1129_v13 = vpop.permute.xlu0 %1128 }
 0xddf   :  { %3328 = vmatmul.mubr.msk.bf16.vlgmr.msra.gmra.mrb[28].mxu1 %vm303_vm3, %v1129_v13  ;;  %v266_v13 = vadd.f32 %v3904_v39, %v3846_v8 }
 0xde0   :  { %3340 = vmatpush3.bf16.msra.mxu1 %v3824_v3  ;;  %3343 = vmatprep.mubr.msk.bf16.mxu1 %vm3763_vm0, %v3761_v0 }
 0xde1   :  { %3341 = vmatprep.subr.bf16.mxu1 %v3761_v0 }
 0xde3   :  { %v1175_v15 = vpop.permute.xlu1 %1174 }
 0xde4   :  { %3342 = vmatpush3.bf16.msra.mxu1 %v3833_v6  ;;  %3336 = vmatmul.mubr.msk.bf16.vlgmr.msra.gmra.mrb[32].mxu0 %vm303_vm3, %v1175_v15 }
 0xde5   :  { %3355 = vmatprep.subr.bf16.mxu1 %v3761_v0  ;;  %3348 = vmatpush3.bf16.msra.mxu0 %v3877_v31 }
 0xde6   :  { %3349 = vmatprep.subr.bf16.mxu0 %v3761_v0  ;;  %3351 = vmatprep.mubr.msk.bf16.mxu0 %vm3763_vm0, %v3761_v0 }
 0xde7   :  { %3344 = vmatmul.mubr.msk.bf16.vlgmr.msra.gmra.mrb[32].mxu1 %vm303_vm3, %v1175_v15 }
 0xde8   :  { %3356 = vmatpush3.bf16.msra.mxu1 %v3885_v34  ;;  %3359 = vmatprep.mubr.msk.bf16.mxu1 %vm3763_vm0, %v3761_v0 }
 0xde9   :  { %3357 = vmatprep.subr.bf16.mxu1 %v3761_v0  ;;  %3350 = vmatpush3.bf16.msra.mxu0 %v3880_v33 }
 0xdea   :  { %3363 = vmatprep.subr.bf16.mxu0 %v3761_v0 }
 0xdec   :  { %3358 = vmatpush3.bf16.msra.mxu1 %v3890_v35 }
 0xded   :  { %3371 = vmatprep.subr.bf16.mxu1 %v3761_v0 }
 0xeb2   :  { %v1167_v20 = vpop.f32.mrb[28].mxu1 }
 0xeb3   :  { %v3329_v18 = vpop.f32.mrb[29].mxu1 }
 0xeb4   :  { %v1170_v21 = vpop.f32.mrb[30].mxu1 }
 0xeb5   :  { %v3330_v23 = vpop.f32.mrb[31].mxu1 }
 0xeb7   :  { %v1213_v22 = vpop.f32.mrb[32].mxu0 }
 0xeb8   :  { %v1214_v24 = vadd.f32 %v1213_v22, %v1167_v20  ;;  %v3337_v25 = vpop.f32.mrb[33].mxu0 }
 0xeb9   :  { %v1216_v27 = vpop.f32.mrb[34].mxu0 }
 0xeba   :  { %v1219_v19 = vadd.f32 %v3934_v49, %v1214_v24  ;;  %v1278_v28 = vpop.f32.mrb[32].mxu1  ;;  %v3338_v29 = vpop.f32.mrb[35].mxu0 }
 0xebb   :  { %v1284_v30 = vadd.f32 %v1278_v28, %v261_v26  ;;  %v3345_v32 = vpop.f32.mrb[33].mxu1 }
 0xebc   :  { %3684 = vtanh.f32 %v1219_v19  ;;  %v1281_v36 = vpop.f32.mrb[34].mxu1  ;;  %v3015_v44 = vmul.f32 -1.442695, %v1219_v19 }
 0xebd   :  { %3686 = vtanh.f32 %v1284_v30  ;;  %v3346_v37 = vpop.f32.mrb[35].mxu1  ;;  %v3017_v45 = vmul.f32 -1.442695, %v1284_v30 }
 0xebe   :  { %3688 = vpow2.f32 %v3015_v44 }
 0xebf   :  { %3690 = vpow2.f32 %v3017_v45 }
 0xec6   :  { %v3685_v38 = vpop.eup %3684 }
 0xec7   :  { %v3687_v43 = vpop.eup %3686  ;;  %1229 = vrot.lane.b32.xlu0 %v3685_v38, %s3766_s18 }
 0xec8   :  { %1294 = vrot.lane.b32.xlu1 %v3687_v43, %s3766_s18  ;;  %v3689_v42 = vpop.eup %3688 }
 0xec9   :  { %v3691_v46 = vpop.eup %3690  ;;  %v1223_v47 = vadd.f32 1.0, %v3689_v42 }
 0xeca   :  { %v1288_v48 = vadd.f32 1.0, %v3691_v46 }
 0xecb   :  { %3692 = vrcp.f32 %v1223_v47 }
 0xecc   :  { %3694 = vrcp.f32 %v1288_v48 }
 0xed5   :  { %v3693_v50 = vpop.eup %3692 }
 0xed6   :  { %v3695_v52 = vpop.eup %3694  ;;  %v1227_v40 = vmul.f32 %v3693_v50, %v4061_v63 }
 0xed7   :  { %v1292_v12 = vmul.f32 %v3695_v52, %v4065_v2 }
 0xf39   :  { %v1230_v51 = vpop.permute.xlu0 %1229 }
 0xf3a   :  { %v1295_v53 = vpop.permute.xlu1 %1294  ;;  %v1232_v54 = vmul.f32 %v3693_v50, %v1230_v51 }
 0xf3b   :  { %v1297_v55 = vmul.f32 %v3695_v52, %v1295_v53 }
 0xf3c   :  { %1234 = vrot.lane.b32.xlu0 %v1232_v54, %s3766_s18 }
 0xf3d   :  { %1299 = vrot.lane.b32.xlu1 %v1297_v55, %s3766_s18 }
 0xfae   :  { %v1235_v56 = vpop.permute.xlu0 %1234 }
 0xfaf   :  { %v1300_v57 = vpop.permute.xlu1 %1299  ;;  %v4102_v58 = vadd.f32 %v1235_v56, %v1227_v40  ;;  %v3752_v40 = vld [vmem:[%s3812_s10] sm:$0xff]   ;;  %v3753_v56 = vld [vmem:[%s3812_s10 + $0x8] sm:$0xff]   ;;  %s3773_s10 = smov 8  }
 0xfb0   :  { %v4104_v59 = vadd.f32 %v1300_v57, %v1292_v12  ;;  %v3754_v57 = vld [vmem:[%s3865_s22] sm:$0xff]   ;;  %s2948_s13 = sld [smem:[%s4382_s0 + %s3773_s10]]  }
 0xfb1   :  { %3696 = vtanh.f32 %v4102_v58 }
 0xfb2   :  { %3698 = vtanh.f32 %v4104_v59 }
 0xfbb   :  { %v3697_v60 = vpop.eup %3696 }
 0xfbc   :  { %v3699_v61 = vpop.eup %3698  ;;  %1240 = vrot.lane.b32.xlu0 %v3697_v60, %s3766_s18  ;;  %v3757_v60 = vld [vmem:[%s3870_s26 + $0x8] sm:$0xff]  }
 0xfbd   :  { %1305 = vrot.lane.b32.xlu1 %v3699_v61, %s3766_s18 }
0x102e   :  { %v1241_v62 = vpop.permute.xlu0 %1240 }
0x102f   :  { %v1306_v63 = vpop.permute.xlu1 %1305  ;;  %v1243_v1 = vmul.f32 %v3693_v50, %v1241_v62 }
0x1030   :  { %v1308_v9 = vmul.f32 %v3695_v52, %v1306_v63 }
0x1031   :  { %v1310_v2 = vpack.c.bf16 %v1243_v1, %v1243_v1 }
0x1032   :  { %v1309_v4 = vpack.c.bf16 %v1308_v9, %v1308_v9 }
0x1033   :  { %1312 = vrot.lane.b32.xlu0 %v1310_v2, %s3769_s27 }
0x1034   :  { %1358 = vrot.lane.b32.xlu1 %v1309_v4, %s3769_s27 }
0x10a5   :  { %v1313_v5 = vpop.permute.xlu0 %1312 }
0x10a6   :  { %v1359_v7 = vpop.permute.xlu1 %1358  ;;  %3352 = vmatmul.mubr.msk.bf16.vlgmr.msra.gmra.mrb[36].mxu0 %vm303_vm3, %v1313_v5  ;;  %v3758_v5 = vld [vmem:[%s3843_s17] ss:$0 sm:$0xff]  ;;  %s2954_s17 = sld [smem:[%s4382_s0 + %s3774_s14]]  }
0x10a7   :  { %3360 = vmatmul.mubr.msk.bf16.vlgmr.msra.gmra.mrb[36].mxu1 %vm303_vm3, %v1359_v7  ;;  %3364 = vmatpush3.bf16.msra.mxu0 %v3824_v3 }
0x10a8   :  { %3365 = vmatprep.subr.bf16.mxu0 %v3761_v0  ;;  %3367 = vmatprep.mubr.msk.bf16.mxu0 %vm3763_vm0, %v3761_v0 }
0x10a9   :  { %3372 = vmatpush3.bf16.msra.mxu1 %v3877_v31  ;;  %3375 = vmatprep.mubr.msk.bf16.mxu1 %vm3763_vm0, %v3761_v0 }
0x10aa   :  { %3373 = vmatprep.subr.bf16.mxu1 %v3761_v0 }
0x10ab   :  { %3366 = vmatpush3.bf16.msra.mxu0 %v3833_v6 }
0x10ac   :  { %3379 = vmatprep.subr.bf16.mxu0 %v3761_v0 }
0x10ad   :  { %3374 = vmatpush3.bf16.msra.mxu1 %v3880_v33 }
0x10ae   :  { %3368 = vmatmul.mubr.msk.bf16.vlgmr.msra.gmra.mrb[40].mxu0 %vm303_vm3, %v1359_v7  ;;  %3387 = vmatprep.subr.bf16.mxu1 %v3761_v0  ;;  %v269_v7 = vadd.f32 %v3758_v5, %v3908_v41  ;;  %v3589_v5 = vld [vmem:[%s2947_s5 + $0x8] sm:$0xff]  }
0x10af   :  { %3380 = vmatpush3.bf16.msra.mxu0 %v3885_v34  ;;  %3383 = vmatprep.mubr.msk.bf16.mxu0 %vm3763_vm0, %v3761_v0 }
0x10b0   :  { %3381 = vmatprep.subr.bf16.mxu0 %v3761_v0 }
0x10b3   :  { %3382 = vmatpush3.bf16.msra.mxu0 %v3890_v35 }
0x10b4   :  { %3395 = vmatprep.subr.bf16.mxu0 %v3761_v0 }
0x1179   :  { %v1351_v3 = vpop.f32.mrb[36].mxu0 }
0x117a   :  { %v1397_v6 = vpop.f32.mrb[36].mxu1  ;;  %v3353_v31 = vpop.f32.mrb[37].mxu0 }
0x117b   :  { %v1398_v10 = vadd.f32 %v1397_v6, %v1351_v3  ;;  %v3361_v33 = vpop.f32.mrb[37].mxu1  ;;  %v1354_v11 = vpop.f32.mrb[38].mxu0 }
0x117c   :  { %v1400_v14 = vpop.f32.mrb[38].mxu1  ;;  %v3354_v16 = vpop.f32.mrb[39].mxu0 }
0x117d   :  { %v1403_v17 = vadd.f32 %v3934_v49, %v1398_v10  ;;  %v3362_v34 = vpop.f32.mrb[39].mxu1 }
0x117f   :  { %3700 = vtanh.f32 %v1403_v17  ;;  %v3020_v24 = vmul.f32 -1.442695, %v1403_v17 }
0x1181   :  { %v1462_v15 = vpop.f32.mrb[40].mxu0 }
0x1182   :  { %v1468_v20 = vadd.f32 %v1462_v15, %v266_v13  ;;  %v3369_v35 = vpop.f32.mrb[41].mxu0 }
0x1183   :  { %v1465_v18 = vpop.f32.mrb[42].mxu0 }
0x1184   :  { %3702 = vtanh.f32 %v1468_v20  ;;  %v3370_v21 = vpop.f32.mrb[43].mxu0  ;;  %v3022_v25 = vmul.f32 -1.442695, %v1468_v20 }
0x1185   :  { %3704 = vpow2.f32 %v3020_v24 }
0x1186   :  { %3706 = vpow2.f32 %v3022_v25 }
0x1189   :  { %v3701_v23 = vpop.eup %3700 }
0x118a   :  { %1413 = vrot.lane.b32.xlu0 %v3701_v23, %s3766_s18 }
0x118e   :  { %v3703_v22 = vpop.eup %3702 }
0x118f   :  { %1478 = vrot.lane.b32.xlu1 %v3703_v22, %s3766_s18  ;;  %v3705_v26 = vpop.eup %3704 }
0x1190   :  { %v1407_v27 = vadd.f32 1.0, %v3705_v26  ;;  %v3707_v19 = vpop.eup %3706 }
0x1191   :  { %v1472_v8 = vadd.f32 1.0, %v3707_v19 }
0x1192   :  { %3708 = vrcp.f32 %v1407_v27 }
0x1193   :  { %3710 = vrcp.f32 %v1472_v8 }
0x119c   :  { %v3709_v39 = vpop.eup %3708 }
0x119d   :  { %v3711_v30 = vpop.eup %3710  ;;  %v1411_v37 = vmul.f32 %v3709_v39, %v4102_v58  ;;  %v3755_v58 = vld [vmem:[%s3870_s26] sm:$0xff]   ;;  %s2951_s26 = sld [smem:[%s4382_s0 + %s3776_s23]]   ;;  %s3797_s23 = smov 30  }
0x119e   :  { %v1476_v44 = vmul.f32 %v3711_v30, %v4104_v59  ;;  %v3756_v59 = vld [vmem:[%s3865_s22 + $0x8] sm:$0xff]   ;;  %s2950_s22 = sld [smem:[%s4382_s0 + %s3775_s19]]   ;;  %s3796_s19 = smov 34  }
0x11fc   :  { %v1414_v28 = vpop.permute.xlu0 %1413 }
0x11fd   :  { %v1416_v29 = vmul.f32 %v3709_v39, %v1414_v28 }
0x11ff   :  { %1418 = vrot.lane.b32.xlu0 %v1416_v29, %s3766_s18 }
0x1201   :  { %v1479_v32 = vpop.permute.xlu1 %1478 }
0x1202   :  { %v1481_v36 = vmul.f32 %v3711_v30, %v1479_v32 }
0x1204   :  { %1483 = vrot.lane.b32.xlu1 %v1481_v36, %s3766_s18 }
0x1271   :  { %v1419_v38 = vpop.permute.xlu0 %1418 }
0x1272   :  { %v4141_v43 = vadd.f32 %v1419_v38, %v1411_v37 }
0x1274   :  { %3712 = vtanh.f32 %v4141_v43 }
0x1276   :  { %v1484_v45 = vpop.permute.xlu1 %1483 }
0x1277   :  { %v4145_v42 = vadd.f32 %v1484_v45, %v1476_v44 }
0x1279   :  { %3714 = vtanh.f32 %v4145_v42 }
0x127e   :  { %v3713_v46 = vpop.eup %3712 }
0x127f   :  { %1424 = vrot.lane.b32.xlu0 %v3713_v46, %s3766_s18 }
0x1283   :  { %v3715_v47 = vpop.eup %3714 }
0x1284   :  { %1489 = vrot.lane.b32.xlu1 %v3715_v47, %s3766_s18 }
0x12f1   :  { %v1425_v48 = vpop.permute.xlu0 %1424 }
0x12f2   :  { %v1427_v50 = vmul.f32 %v3709_v39, %v1425_v48 }
0x12f4   :  { %v1494_v51 = vpack.c.bf16 %v1427_v50, %v1427_v50 }
0x12f6   :  { %1496 = vrot.lane.b32.xlu0 %v1494_v51, %s3769_s27  ;;  %v1490_v52 = vpop.permute.xlu1 %1489 }
0x12f7   :  { %v1492_v53 = vmul.f32 %v3711_v30, %v1490_v52 }
0x12f9   :  { %v1493_v54 = vpack.c.bf16 %v1492_v53, %v1492_v53 }
0x12fb   :  { %1542 = vrot.lane.b32.xlu1 %v1493_v54, %s3769_s27 }
0x1368   :  { %v1497_v55 = vpop.permute.xlu0 %1496 }
0x1369   :  { %3376 = vmatmul.mubr.msk.bf16.vlgmr.msra.gmra.mrb[40].mxu1 %vm303_vm3, %v1497_v55  ;;  %v3759_v55 = vld [vmem:[%s3929_s1] ss:$0 sm:$0xff]  ;;  %s3778_s1 = smov 15  }
0x136a   :  { %3388 = vmatpush3.bf16.msra.mxu1 %v3752_v40  ;;  %3391 = vmatprep.mubr.msk.bf16.mxu1 %vm3763_vm0, %v3761_v0  ;;  %s2955_s4 = sld [smem:[%s4382_s0 + %s3778_s1]]  }
0x136b   :  { %3389 = vmatprep.subr.bf16.mxu1 %v3761_v0 }
0x136d   :  { %v1543_v12 = vpop.permute.xlu1 %1542 }
0x136e   :  { %3390 = vmatpush3.bf16.msra.mxu1 %v3753_v56  ;;  %3384 = vmatmul.mubr.msk.bf16.vlgmr.msra.gmra.mrb[44].mxu0 %vm303_vm3, %v1543_v12 }
0x136f   :  { %3403 = vmatprep.subr.bf16.mxu1 %v3761_v0  ;;  %3396 = vmatpush3.bf16.msra.mxu0 %v3754_v57 }
0x1370   :  { %3397 = vmatprep.subr.bf16.mxu0 %v3761_v0  ;;  %3399 = vmatprep.mubr.msk.bf16.mxu0 %vm3763_vm0, %v3761_v0 }
0x1371   :  { %3392 = vmatmul.mubr.msk.bf16.vlgmr.msra.gmra.mrb[44].mxu1 %vm303_vm3, %v1543_v12 }
0x1372   :  { %3404 = vmatpush3.bf16.msra.mxu1 %v3755_v58  ;;  %3407 = vmatprep.mubr.msk.bf16.mxu1 %vm3763_vm0, %v3761_v0 }
0x1373   :  { %3405 = vmatprep.subr.bf16.mxu1 %v3761_v0  ;;  %3398 = vmatpush3.bf16.msra.mxu0 %v3756_v59 }
0x1374   :  { %3411 = vmatprep.subr.bf16.mxu0 %v3761_v0 }
0x1376   :  { %3406 = vmatpush3.bf16.msra.mxu1 %v3757_v60 }
0x1377   :  { %3419 = vmatprep.subr.bf16.mxu1 %v3761_v0 }
0x143c   :  { %v1535_v61 = vpop.f32.mrb[40].mxu1 }
0x143d   :  { %v3377_v62 = vpop.f32.mrb[41].mxu1 }
0x143e   :  { %v1538_v63 = vpop.f32.mrb[42].mxu1 }
0x143f   :  { %v3378_v1 = vpop.f32.mrb[43].mxu1 }
0x1441   :  { %v1581_v9 = vpop.f32.mrb[44].mxu0 }
0x1442   :  { %v1582_v2 = vadd.f32 %v1581_v9, %v1535_v61  ;;  %v3385_v4 = vpop.f32.mrb[45].mxu0 }
0x1443   :  { %v1584_v3 = vpop.f32.mrb[46].mxu0 }
0x1444   :  { %v1587_v6 = vadd.f32 %v3934_v49, %v1582_v2  ;;  %v1646_v31 = vpop.f32.mrb[44].mxu1  ;;  %v3386_v10 = vpop.f32.mrb[47].mxu0  ;;  %v3588_v2 = vld [vmem:[%s2947_s5] sm:$0xff]   ;;  %s3779_s5 = smov 18  }
0x1445   :  { %v1652_v33 = vadd.f32 %v1646_v31, %v269_v7  ;;  %v3393_v11 = vpop.f32.mrb[45].mxu1  ;;  %v3590_v10 = vld [vmem:[%s2949_s9] sm:$0xff]   ;;  %s2958_s8 = sld [smem:[%s4382_s0 + %s3779_s5]]  }
0x1446   :  { %3716 = vtanh.f32 %v1587_v6  ;;  %v1649_v14 = vpop.f32.mrb[46].mxu1  ;;  %v3025_v13 = vmul.f32 -1.442695, %v1587_v6  ;;  %v3031_v11 = vld [vmem:[%s2948_s13] ss:$0 sm:$0xff]  ;;  %s3781_s13 = smov 12  }
0x1447   :  { %3718 = vtanh.f32 %v1652_v33  ;;  %v3394_v16 = vpop.f32.mrb[47].mxu1  ;;  %v3027_v15 = vmul.f32 -1.442695, %v1652_v33  ;;  %v3591_v33 = vld [vmem:[%s2949_s9 + $0x8] sm:$0xff]   ;;  %s3780_s9 = smov 17   ;;  %s2952_s16 = sld [smem:[%s4382_s0 + %s3781_s13]]  }
0x1448   :  { %3720 = vpow2.f32 %v3025_v13  ;;  %s2957_s12 = sld [smem:[%s4382_s0 + %s3780_s9]]  }
0x1449   :  { %3722 = vpow2.f32 %v3027_v15 }
0x1450   :  { %v3717_v17 = vpop.eup %3716 }
0x1451   :  { %v3719_v34 = vpop.eup %3718  ;;  %1597 = vrot.lane.b32.xlu0 %v3717_v17, %s3766_s18 }
0x1452   :  { %1662 = vrot.lane.b32.xlu1 %v3719_v34, %s3766_s18  ;;  %v3721_v41 = vpop.eup %3720 }
0x1453   :  { %v3723_v49 = vpop.eup %3722  ;;  %v1591_v20 = vadd.f32 1.0, %v3721_v41 }
0x1454   :  { %v1656_v35 = vadd.f32 1.0, %v3723_v49  ;;  %v3592_v49 = vld [vmem:[%s2954_s17] sm:$0xff]   ;;  %s3782_s17 = smov 13  }
0x1455   :  { %3724 = vrcp.f32 %v1591_v20  ;;  %v3035_v20 = vld [vmem:[%s2950_s22] ss:$0 sm:$0xff]  ;;  %s2953_s21 = sld [smem:[%s4382_s0 + %s3782_s17]]   ;;  %s3783_s22 = smov 21  }
0x1456   :  { %3726 = vrcp.f32 %v1656_v35  ;;  %s2961_s25 = sld [smem:[%s4382_s0 + %s3783_s22]]  }
0x1457   :  { %s2972_s17 = sld [smem:[%s4382_s0 + %s3766_s18]]  }
0x1458   :  { %s2974_s22 = sld [smem:[%s4382_s0 + %s3796_s19]]  }
0x145f   :  { %v3725_v18 = vpop.eup %3724 }
0x1460   :  { %v3727_v23 = vpop.eup %3726  ;;  %v1595_v26 = vmul.f32 %v3725_v18, %v4141_v43 }
0x1461   :  { %v1660_v27 = vmul.f32 %v3727_v23, %v4145_v42 }
0x14c3   :  { %v1598_v21 = vpop.permute.xlu0 %1597 }
0x14c4   :  { %v1663_v22 = vpop.permute.xlu1 %1662  ;;  %v1600_v24 = vmul.f32 %v3725_v18, %v1598_v21 }
0x14c5   :  { %v1665_v25 = vmul.f32 %v3727_v23, %v1663_v22 }
0x14c6   :  { %1602 = vrot.lane.b32.xlu0 %v1600_v24, %s3766_s18 }
0x14c7   :  { %1667 = vrot.lane.b32.xlu1 %v1665_v25, %s3766_s18 }
0x1538   :  { %v1603_v19 = vpop.permute.xlu0 %1602 }
0x1539   :  { %v1668_v8 = vpop.permute.xlu1 %1667  ;;  %v1605_v39 = vadd.f32 %v1603_v19, %v1595_v26 }
0x153a   :  { %v1670_v28 = vadd.f32 %v1668_v8, %v1660_v27 }
0x153b   :  { %3728 = vtanh.f32 %v1605_v39 }
0x153c   :  { %3730 = vtanh.f32 %v1670_v28  ;;  %v1934_v28 = vld [vmem:[%s2951_s26] sm:$0xf]  ;;  %s3784_s26 = smov 20  }
0x153d   :  { %s2960_s29 = sld [smem:[%s4382_s0 + %s3784_s26]]  }
0x153e   :  { %s2970_s26 = sld [smem:[%s4382_s0 + %s3797_s23]]  }
0x1545   :  { %v3729_v29 = vpop.eup %3728 }
0x1546   :  { %v3731_v30 = vpop.eup %3730  ;;  %1608 = vrot.lane.b32.xlu0 %v3729_v29, %s3766_s18 }
0x1547   :  { %1673 = vrot.lane.b32.xlu1 %v3731_v30, %s3766_s18 }
0x15b8   :  { %v1609_v32 = vpop.permute.xlu0 %1608 }
0x15b9   :  { %v1674_v36 = vpop.permute.xlu1 %1673  ;;  %v1611_v37 = vmul.f32 %v3725_v18, %v1609_v32  ;;  %v3041_v32 = vld [vmem:[%s2955_s4] ss:$0 sm:$0xff]  ;;  %s3786_s4 = smov 23  }
0x15ba   :  { %v1676_v38 = vmul.f32 %v3727_v23, %v1674_v36  ;;  %s2963_s7 = sld [smem:[%s4382_s0 + %s3786_s4]]  }
0x15bb   :  { %v1678_v44 = vpack.c.bf16 %v1611_v37, %v1611_v37 }
0x15bc   :  { %v1677_v43 = vpack.c.bf16 %v1676_v38, %v1676_v38 }
0x15bd   :  { %1680 = vrot.lane.b32.xlu0 %v1678_v44, %s3769_s27 }
0x15be   :  { %1726 = vrot.lane.b32.xlu1 %v1677_v43, %s3769_s27 }
0x162f   :  { %v1681_v45 = vpop.permute.xlu0 %1680 }
0x1630   :  { %v1727_v42 = vpop.permute.xlu1 %1726  ;;  %3400 = vmatmul.mubr.msk.bf16.vlgmr.msra.gmra.mrb[48].mxu0 %vm303_vm3, %v1681_v45 }
0x1631   :  { %3408 = vmatmul.mubr.msk.bf16.vlgmr.msra.gmra.mrb[48].mxu1 %vm303_vm3, %v1727_v42  ;;  %3415 = vmatprep.mubr.msk.bf16.mxu0 %vm3763_vm0, %v3761_v0 }
0x1632   :  { %3423 = vmatprep.mubr.msk.bf16.mxu1 %vm3763_vm0, %v3761_v0  ;;  %3412 = vmatpush3.bf16.msra.mxu0 %v3588_v2 }
0x1633   :  { %3413 = vmatprep.subr.bf16.mxu0 %v3761_v0  ;;  %3420 = vmatpush3.bf16.msra.mxu1 %v3590_v10 }
0x1634   :  { %3421 = vmatprep.subr.bf16.mxu1 %v3761_v0 }
0x1636   :  { %3414 = vmatpush3.bf16.msra.mxu0 %v3589_v5 }
0x1637   :  { %3427 = vmatprep.subr.bf16.mxu0 %v3761_v0  ;;  %3422 = vmatpush3.bf16.msra.mxu1 %v3591_v33 }
0x1638   :  { %3433 = vmatprep.subr.bf16.mxu1 %v3761_v0 }
0x1703   :  { %v1719_v46 = vpop.f32.mrb[48].mxu0 }
0x1704   :  { %v1765_v47 = vpop.f32.mrb[48].mxu1  ;;  %v3401_v48 = vpop.f32.mrb[49].mxu0 }
0x1705   :  { %v1766_v50 = vadd.f32 %v1765_v47, %v1719_v46  ;;  %v3409_v51 = vpop.f32.mrb[49].mxu1  ;;  %v1722_v52 = vpop.f32.mrb[50].mxu0 }
0x1706   :  { %v1768_v53 = vpop.f32.mrb[50].mxu1  ;;  %v3402_v54 = vpop.f32.mrb[51].mxu0 }
0x1707   :  { %v1771_v40 = vadd.f32 %v3759_v55, %v1766_v50  ;;  %v3410_v12 = vpop.f32.mrb[51].mxu1  ;;  %v3595_v53 = vld [vmem:[%s2958_s8] sm:$0xff]   ;;  %v3596_v54 = vld [vmem:[%s2958_s8 + $0x8] sm:$0xff]   ;;  %s3787_s8 = smov 27  }
0x1708   :  { %v3046_v55 = vld [vmem:[%s2957_s12] ss:$0 sm:$0xff]  ;;  %s2967_s11 = sld [smem:[%s4382_s0 + %s3787_s8]]   ;;  %s3788_s12 = smov 31  }
0x1709   :  { %3732 = vtanh.f32 %v1771_v40  ;;  %v3030_v57 = vmul.f32 -1.442695, %v1771_v40  ;;  %s2971_s15 = sld [smem:[%s4382_s0 + %s3788_s12]]  }
0x170b   :  { %3734 = vpow2.f32 %v3030_v57 }
0x1713   :  { %v3733_v56 = vpop.eup %3732 }
0x1714   :  { %1781 = vrot.lane.b32.xlu0 %v3733_v56, %s3766_s18 }
0x1715   :  { %v3735_v58 = vpop.eup %3734 }
0x1716   :  { %v1775_v59 = vadd.f32 1.0, %v3735_v58 }
0x1718   :  { %3736 = vrcp.f32 %v1775_v59 }
0x1722   :  { %v3737_v60 = vpop.eup %3736 }
0x1723   :  { %v1779_v63 = vmul.f32 %v3737_v60, %v1605_v39 }
0x1786   :  { %v1782_v61 = vpop.permute.xlu0 %1781 }
0x1787   :  { %v1784_v62 = vmul.f32 %v3737_v60, %v1782_v61 }
0x1789   :  { %1786 = vrot.lane.b32.xlu1 %v1784_v62, %s3766_s18 }
0x17fb   :  { %v1787_v1 = vpop.permute.xlu1 %1786 }
0x17fc   :  { %v1789_v9 = vadd.f32 %v1787_v1, %v1779_v63 }
0x17fe   :  { %3738 = vtanh.f32 %v1789_v9 }
0x1808   :  { %v3739_v4 = vpop.eup %3738 }
0x1809   :  { %1792 = vrot.lane.b32.xlu0 %v3739_v4, %s3766_s18 }
0x187b   :  { %v1793_v7 = vpop.permute.xlu0 %1792 }
0x187c   :  { %v1795_v3 = vmul.f32 %v3737_v60, %v1793_v7 }
0x187e   :  { %v1796_v6 = vpack.c.bf16 %v1795_v3, %v1795_v3 }
0x1880   :  { %1809 = vrot.lane.b32.xlu1 %v1796_v6, %s3769_s27  ;;  %s3777_s27 = smov 16  }
0x1881   :  { %s2956_s30 = sld [smem:[%s4382_s0 + %s3777_s27]]   ;;  %s3798_s27 = smov 36  }
0x1887   :  { %v3593_v29 = vld [vmem:[%s2956_s30] sm:$0xff]   ;;  %v3594_v30 = vld [vmem:[%s2956_s30 + $0x8] sm:$0xff]   ;;  %s3785_s30 = smov 19  }
0x1888   :  { %s2959_s3 = sld [smem:[%s4382_s0 + %s3785_s30]]   ;;  %s3799_s30 = smov 35  }
0x188e   :  { %v3051_v4 = vld [vmem:[%s2959_s3] ss:$0 sm:$0xff]  ;;  %s3793_s3 = smov 26  }
0x188f   :  { %s2966_s6 = sld [smem:[%s4382_s0 + %s3793_s3]]  }
0x1890   :  { %s2975_s3 = sld [smem:[%s4382_s0 + %s3799_s30]]  }
0x18f2   :  { %v1810_v31 = vpop.permute.xlu1 %1809 }
0x18f3   :  { %3416 = vmatmul.mubr.msk.bf16.vlgmr.msra.gmra.mrb[52].mxu0 %vm303_vm3, %v1810_v31 }
0x18f4   :  { %3429 = vmatprep.mubr.msk.bf16.mxu0 %vm3763_vm0, %v3761_v0  ;;  %3428 = vmatpush3.bf16.msra.mxu0 %v3592_v49 }
0x18f5   :  { %3439 = vmatprep.subr.bf16.mxu0 %v3761_v0 }
0x19c6   :  { %v1860_v14 = vpop.f32.mrb[52].mxu0 }
0x19c7   :  { %v1861_v16 = vadd.f32 %v3031_v11, %v1860_v14  ;;  %v3417_v17 = vpop.f32.mrb[53].mxu0  ;;  %v3597_v14 = vld [vmem:[%s2952_s16] sm:$0xff]   ;;  %s3789_s16 = smov 22  }
0x19c8   :  { %v1863_v34 = vpop.f32.mrb[54].mxu0  ;;  %v3599_v17 = vld [vmem:[%s2961_s25] sm:$0xff]   ;;  %s2962_s20 = sld [smem:[%s4382_s0 + %s3789_s16]]  }
0x19c9   :  { %v1866_v13 = vmax.f32 %v1861_v16, 0.0  ;;  %v3418_v15 = vpop.f32.mrb[55].mxu0  ;;  %v3598_v16 = vld [vmem:[%s2953_s21] sm:$0xff]   ;;  %s3790_s21 = smov 25  }
0x19ca   :  { %v3600_v34 = vld [vmem:[%s2960_s29] sm:$0xff]   ;;  %v3602_v15 = vld [vmem:[%s2960_s29 + $0x8] sm:$0xff]   ;;  %s2965_s24 = sld [smem:[%s4382_s0 + %s3790_s21]]   ;;  %s3792_s29 = smov 33  }
0x19cb   :  { %v1867_v41 = vpack.c.bf16 %v1866_v13, %v1866_v13  ;;  %v3601_v13 = vld [vmem:[%s2961_s25 + $0x8] sm:$0xff]   ;;  %s3791_s25 = smov 29   ;;  %s4343_s2 = sld [smem:[%s4382_s0 + %s3792_s29]]  }
0x19cc   :  { %s2969_s28 = sld [smem:[%s4382_s0 + %s3791_s25]]  }
0x19cd   :  { %3424 = vmatmul.mubr.msk.bf16.vlgmr.msra.gmra.mrb[52].mxu1 %vm303_vm3, %v1867_v41 }
0x19ce   :  { %3435 = vmatprep.mubr.msk.bf16.mxu1 %vm3763_vm0, %v3761_v0 }
0x1aa0   :  { %v1928_v35 = vpop.f32.mrb[52].mxu1 }
0x1aa1   :  { %v1929_v18 = vadd.f32 %v3035_v20, %v1928_v35  ;;  %v3425_v21 = vpop.f32.mrb[53].mxu1 }
0x1aa2   :  { %v1931_v23 = vpop.f32.mrb[54].mxu1 }
0x1aa3   :  { %v1935_v22 = vpack.c.bf16 %v1929_v18, %v1929_v18  ;;  %v3426_v24 = vpop.f32.mrb[55].mxu1 }
0x1aa5   :  { %3430 = vmatmul.mubr.msk.bf16.vlgmr.msra.gmra.mrb[56].mxu0 %vm1944_vm4, %v1935_v22 }
0x1aa6   :  { %3443 = vmatprep.mubr.msk.bf16.mxu0 %vm3763_vm0, %v3761_v0  ;;  %3440 = vmatpush3.bf16.msra.mxu0 %v3593_v29 }
0x1aa7   :  { %3441 = vmatprep.subr.bf16.mxu0 %v3761_v0 }
0x1aaa   :  { %3442 = vmatpush3.bf16.msra.mxu0 %v3594_v30 }
0x1aab   :  { %3453 = vmatprep.subr.bf16.mxu0 %v3761_v0 }
0x1b78   :  { %v1982_v25 = vpop.f32.mrb[56].mxu0 }
0x1b79   :  { %v1988_v26 = vpack.c.bf16 %v1982_v25, %v1982_v25  ;;  %v3431_v27 = vpop.f32.mrb[57].mxu0 }
0x1b7a   :  { %v1985_v19 = vpop.f32.mrb[58].mxu0  ;;  %v3604_v27 = vld [vmem:[%s2963_s7 + $0x8] sm:$0xff]  }
0x1b7b   :  { %v2000_v8 = vsel %vm203_vm1, %v1988_v26, 0  ;;  %v3432_v39 = vpop.f32.mrb[59].mxu0  ;;  %v3603_v26 = vld [vmem:[%s2963_s7] sm:$0xff]   ;;  %s3794_s7 = smov 24  }
0x1b7c   :  { %3434 = vmatpush3.bf16.msra.mxu1 %v2000_v8  ;;  %v3063_v39 = vld [vmem:[%s2962_s20] ss:$0 sm:$0xff]  ;;  %s2964_s10 = sld [smem:[%s4382_s0 + %s3794_s7]]  }
0x1b7d   :  { %3447 = vmatprep.subr.bf16.mxu1 %v3761_v0 }
0x1b7f   :  { %3436 = vmatmul.mubr.msk.bf16.vlgmr.msra.gmra.mrb[56].mxu1 %vm190_vm2, %v1934_v28 }
0x1b80   :  { %3449 = vmatprep.mubr.msk.bf16.mxu1 %vm3763_vm0, %v3761_v0 }
0x1c52   :  { %v2036_v36 = vpop.f32.mrb[56].mxu1 }
0x1c53   :  { %v2037_v37 = vadd.f32 %v3041_v32, %v2036_v36  ;;  %v3437_v38 = vpop.f32.mrb[57].mxu1 }
0x1c54   :  { %v2039_v44 = vpop.f32.mrb[58].mxu1 }
0x1c55   :  { %v2042_v43 = vmax.f32 %v2037_v37, 0.0  ;;  %v3438_v45 = vpop.f32.mrb[59].mxu1 }
0x1c57   :  { %v2043_v42 = vpack.c.bf16 %v2042_v43, %v2042_v43 }
0x1c59   :  { %3444 = vmatmul.mubr.msk.bf16.vlgmr.msra.gmra.mrb[60].mxu0 %vm303_vm3, %v2043_v42 }
0x1c5a   :  { %3457 = vmatprep.mubr.msk.bf16.mxu0 %vm3763_vm0, %v3761_v0  ;;  %3454 = vmatpush3.bf16.msra.mxu0 %v3595_v53  ;;  %v3609_v53 = vld [vmem:[%s2965_s24] sm:$0xff]  }
0x1c5b   :  { %3455 = vmatprep.subr.bf16.mxu0 %v3761_v0 }
0x1c5e   :  { %3456 = vmatpush3.bf16.msra.mxu0 %v3596_v54  ;;  %v79_v54 = vstv %s2966_s6 }
0x1c5f   :  { %3467 = vmatprep.subr.bf16.mxu0 %v3761_v0  ;;  %80 = vst [vmem:[#allocation2] sm:$0x1] %v79_v54 }
0x1d2c   :  { %v2097_v46 = vpop.f32.mrb[60].mxu0 }
0x1d2d   :  { %v2103_v47 = vpack.c.bf16 %v2097_v46, %v2097_v46  ;;  %v3445_v48 = vpop.f32.mrb[61].mxu0 }
0x1d2e   :  { %v2100_v50 = vpop.f32.mrb[62].mxu0 }
0x1d2f   :  { %v2112_v51 = vsel %vm203_vm1, %v2103_v47, 0  ;;  %v3446_v52 = vpop.f32.mrb[63].mxu0  ;;  %v3605_v47 = vld [vmem:[%s2967_s11] sm:$0xff]   ;;  %v3606_v50 = vld [vmem:[%s2967_s11 + $0x8] sm:$0xff]   ;;  %s3795_s11 = smov 28  }
0x1d30   :  { %3448 = vmatpush3.bf16.msra.mxu1 %v2112_v51  ;;  %v3607_v51 = vld [vmem:[%s2971_s15] sm:$0xff]   ;;  %v3608_v52 = vld [vmem:[%s2971_s15 + $0x8] sm:$0xff]   ;;  %s2968_s14 = sld [smem:[%s4382_s0 + %s3795_s11]]  }
0x1d31   :  { %3461 = vmatprep.subr.bf16.mxu1 %v3761_v0 }
0x1d33   :  { %3450 = vmatmul.mubr.msk.bf16.vlgmr.msra.gmra.mrb[60].mxu1 %vm190_vm2, %v1934_v28 }
0x1d34   :  { %3463 = vmatprep.mubr.msk.bf16.mxu1 %vm3763_vm0, %v3761_v0 }
0x1e06   :  { %v2148_v40 = vpop.f32.mrb[60].mxu1 }
0x1e07   :  { %v2149_v12 = vadd.f32 %v3046_v55, %v2148_v40  ;;  %v3451_v56 = vpop.f32.mrb[61].mxu1  ;;  %v3064_v55 = vld [vmem:[%s2964_s10] ss:$0 sm:$0xff] }
0x1e08   :  { %v2151_v57 = vpop.f32.mrb[62].mxu1 }
0x1e09   :  { %v2154_v58 = vmax.f32 %v2149_v12, 0.0  ;;  %v3452_v59 = vpop.f32.mrb[63].mxu1 }
0x1e0b   :  { %v2155_v60 = vpack.c.bf16 %v2154_v58, %v2154_v58 }
0x1e0d   :  { %3458 = vmatmul.mubr.msk.bf16.vlgmr.msra.gmra.mrb[64].mxu0 %vm303_vm3, %v2155_v60 }
0x1e0e   :  { %3469 = vmatprep.mubr.msk.bf16.mxu0 %vm3763_vm0, %v3761_v0 }
0x1ee0   :  { %v2209_v61 = vpop.f32.mrb[64].mxu0 }
0x1ee1   :  { %v2215_v62 = vpack.c.bf16 %v2209_v61, %v2209_v61  ;;  %v3459_v63 = vpop.f32.mrb[65].mxu0 }
0x1ee2   :  { %v2212_v1 = vpop.f32.mrb[66].mxu0  ;;  %v3610_v63 = vld [vmem:[%s2969_s28] sm:$0xff]  }
0x1ee3   :  { %v2224_v9 = vsel %vm203_vm1, %v2215_v62, 0  ;;  %v3460_v2 = vpop.f32.mrb[67].mxu0  ;;  %v3073_v62 = vld [vmem:[%s2968_s14] ss:$0 sm:$0xff] }
0x1ee4   :  { %3462 = vmatpush3.bf16.msra.mxu1 %v2224_v9 }
0x1ee5   :  { %3473 = vmatprep.subr.bf16.mxu1 %v3761_v0 }
0x1ee7   :  { %3464 = vmatmul.mubr.msk.bf16.vlgmr.msra.gmra.mrb[64].mxu1 %vm190_vm2, %v1934_v28 }
0x1ee8   :  { %3475 = vmatprep.mubr.msk.bf16.mxu1 %vm3763_vm0, %v3761_v0 }
0x1fba   :  { %v2260_v5 = vpop.f32.mrb[64].mxu1 }
0x1fbb   :  { %v2261_v7 = vadd.f32 %v3051_v4, %v2260_v5  ;;  %v3465_v3 = vpop.f32.mrb[65].mxu1 }
0x1fbc   :  { %v2263_v6 = vpop.f32.mrb[66].mxu1 }
0x1fbd   :  { %v4281_v31 = vmax.f32 %v2261_v7, 0.0  ;;  %v3466_v10 = vpop.f32.mrb[67].mxu1  ;;  %v3080_v6 = vld [vmem:[%s2972_s17] ss:$0 sm:$0xff] }
0x1fbe   :  { %v3611_v10 = vld [vmem:[%s4343_s2] sm:$0xff]  }
0x1fbf   :  { %v4285_v33 = vpack.c.bf16 %v4281_v31, %v4281_v31 }
0x1fc1   :  { %v2279_v11 = vsel %vm203_vm1, %v4285_v33, 0 }
0x1fc2   :  { %3468 = vmatpush3.bf16.msra.mxu0 %v2279_v11  ;;  %3474 = vmatpush3.bf16.msra.mxu1 %v2279_v11 }
0x1fc3   :  { %3479 = vmatprep.subr.bf16.mxu0 %v3761_v0  ;;  %3487 = vmatprep.subr.bf16.mxu1 %v3761_v0 }
0x1fc5   :  { %3470 = vmatmul.mubr.msk.bf16.vlgmr.msra.gmra.mrb[68].mxu0 %vm190_vm2, %v3597_v14  ;;  %3476 = vmatmul.mubr.msk.bf16.vlgmr.msra.gmra.mrb[68].mxu1 %vm190_vm2, %v3598_v16 }
0x1fc6   :  { %3480 = vmatpush3.bf16.msra.mxu0 %v3599_v17  ;;  %3488 = vmatpush3.bf16.msra.mxu1 %v3600_v34 }
0x1fc7   :  { %3481 = vmatprep.subr.bf16.mxu0 %v3761_v0  ;;  %3489 = vmatprep.subr.bf16.mxu1 %v3761_v0 }
0x1fc8   :  { %3483 = vmatprep.mubr.msk.bf16.mxu0 %vm3763_vm0, %v3761_v0  ;;  %3491 = vmatprep.mubr.msk.bf16.mxu1 %vm3763_vm0, %v3761_v0 }
0x1fca   :  { %3482 = vmatpush3.bf16.msra.mxu0 %v3601_v13  ;;  %3490 = vmatpush3.bf16.msra.mxu1 %v3602_v15 }
0x1fcb   :  { %3495 = vmatprep.subr.bf16.mxu0 %v3761_v0  ;;  %3503 = vmatprep.subr.bf16.mxu1 %v3761_v0 }
0x2098   :  { %v2315_v41 = vpop.f32.mrb[68].mxu0  ;;  %v2366_v49 = vpop.f32.mrb[68].mxu1 }
0x2099   :  { %v3471_v20 = vpop.f32.mrb[69].mxu0  ;;  %v3477_v35 = vpop.f32.mrb[69].mxu1 }
0x209a   :  { %v2318_v18 = vpop.f32.mrb[70].mxu0  ;;  %v2369_v21 = vpop.f32.mrb[70].mxu1 }
0x209b   :  { %v2373_v23 = vpack.c.bf16 %v2318_v18, %v2315_v41  ;;  %v2378_v22 = vpack.c.bf16 %v2369_v21, %v2366_v49  ;;  %v3472_v24 = vpop.f32.mrb[71].mxu0  ;;  %v3478_v25 = vpop.f32.mrb[71].mxu1  ;;  %v81_v41 = vstv %s2974_s22  ;;  %v3068_v49 = vld [vmem:[#allocation2] ss:$0 sm:$0xff] }
0x209c   :  { %82 = vst [vmem:[#allocation3] sm:$0x1] %v81_v41  ;;  %v3077_v25 = vld [vmem:[%s2970_s26] ss:$0 sm:$0xff] }
0x209d   :  { %3484 = vmatmul.mubr.msk.bf16.vlgmr.msra.gmra.mrb[72].mxu0 %vm303_vm3, %v2378_v22  ;;  %3492 = vmatmul.mubr.msk.bf16.vlgmr.msra.gmra.mrb[72].mxu1 %vm303_vm3, %v2373_v23 }
0x209e   :  { %3499 = vmatprep.mubr.msk.bf16.mxu0 %vm3763_vm0, %v3761_v0  ;;  %3505 = vmatprep.mubr.msk.bf16.mxu1 %vm3763_vm0, %v3761_v0 }
0x209f   :  { %3496 = vmatpush3.bf16.msra.mxu0 %v3603_v26  ;;  %3504 = vmatpush3.bf16.msra.mxu1 %v3609_v53 }
0x20a0   :  { %3497 = vmatprep.subr.bf16.mxu0 %v3761_v0  ;;  %3517 = vmatprep.subr.bf16.mxu1 %v3761_v0 }
0x20a3   :  { %3498 = vmatpush3.bf16.msra.mxu0 %v3604_v27 }
0x20a4   :  { %3509 = vmatprep.subr.bf16.mxu0 %v3761_v0 }
0x2170   :  { %v2432_v19 = vpop.f32.mrb[72].mxu0  ;;  %v2488_v8 = vpop.f32.mrb[72].mxu1 }
0x2171   :  { %v2489_v28 = vadd.f32 %v2488_v8, %v2432_v19  ;;  %v3485_v29 = vpop.f32.mrb[73].mxu0  ;;  %v3493_v30 = vpop.f32.mrb[73].mxu1 }
0x2172   :  { %v2435_v32 = vpop.f32.mrb[74].mxu0  ;;  %v2491_v36 = vpop.f32.mrb[74].mxu1 }
0x2173   :  { %v2502_v37 = vadd.f32 %v3063_v39, %v2489_v28  ;;  %v2492_v38 = vadd.f32 %v2491_v36, %v2435_v32  ;;  %v3486_v44 = vpop.f32.mrb[75].mxu0  ;;  %v3494_v43 = vpop.f32.mrb[75].mxu1  ;;  %v3084_v28 = vld [vmem:[#allocation3] ss:$0 sm:$0xff] }
0x2175   :  { %v2503_v45 = vadd.f32 %v3063_v39, %v2492_v38  ;;  %v2504_v42 = vmax.f32 %v2502_v37, 0.0 }
0x2177   :  { %v2505_v46 = vmax.f32 %v2503_v45, 0.0 }
0x2179   :  { %v2506_v48 = vpack.c.bf16 %v2505_v46, %v2504_v42 }
0x217b   :  { %3500 = vmatmul.mubr.msk.bf16.vlgmr.msra.gmra.mrb[76].mxu0 %vm303_vm3, %v2506_v48 }
0x217c   :  { %3510 = vmatpush3.bf16.msra.mxu0 %v3605_v47  ;;  %3513 = vmatprep.mubr.msk.bf16.mxu0 %vm3763_vm0, %v3761_v0 }
0x217d   :  { %3511 = vmatprep.subr.bf16.mxu0 %v3761_v0 }
0x2180   :  { %3512 = vmatpush3.bf16.msra.mxu0 %v3606_v50 }
0x2181   :  { %3523 = vmatprep.subr.bf16.mxu0 %v3761_v0 }
0x2183   :  { %3514 = vmatmul.mubr.msk.bf16.vlgmr.msra.gmra.mrb[80].mxu0 %vm303_vm3, %v4285_v33 }
0x2184   :  { %3524 = vmatpush3.bf16.msra.mxu0 %v3607_v51  ;;  %3527 = vmatprep.mubr.msk.bf16.mxu0 %vm3763_vm0, %v3761_v0 }
0x2185   :  { %3525 = vmatprep.subr.bf16.mxu0 %v3761_v0 }
0x2188   :  { %3526 = vmatpush3.bf16.msra.mxu0 %v3608_v52 }
0x218b   :  { %3528 = vmatmul.mubr.msk.bf16.vlgmr.msra.gmra.mrb[84].mxu0 %vm303_vm3, %v4285_v33 }
0x224e   :  { %v2567_v40 = vpop.f32.mrb[76].mxu0 }
0x224f   :  { %v2568_v12 = vadd.f32 %v3064_v55, %v2567_v40  ;;  %v3501_v56 = vpop.f32.mrb[77].mxu0 }
0x2250   :  { %v2570_v57 = vpop.f32.mrb[78].mxu0 }
0x2251   :  { %v2571_v58 = vadd.f32 %v3064_v55, %v2570_v57  ;;  %v3502_v59 = vpop.f32.mrb[79].mxu0  ;;  %v2574_v60 = vmax.f32 %v2568_v12, 0.0 }
0x2253   :  { %v2575_v61 = vmax.f32 %v2571_v58, 0.0 }
0x2255   :  { %v2576_v1 = vpack.c.bf16 %v2575_v61, %v2574_v60 }
0x2256   :  { %v2707_v9 = vpop.f32.mrb[80].mxu0 }
0x2257   :  { %v2708_v2 = vadd.f32 %v3073_v62, %v2707_v9  ;;  %3506 = vmatmul.mubr.msk.bf16.vlgmr.msra.gmra.mrb[76].mxu1 %vm1944_vm4, %v2576_v1  ;;  %v3515_v4 = vpop.f32.mrb[81].mxu0 }
0x2258   :  { %v2710_v5 = vpop.f32.mrb[82].mxu0  ;;  %3518 = vmatpush3.bf16.msra.mxu1 %v3610_v63  ;;  %3519 = vmatprep.mubr.msk.bf16.mxu1 %vm3763_vm0, %v3761_v0 }
0x2259   :  { %v2713_v7 = vmax.f32 %v2708_v2, 0.0  ;;  %v3516_v3 = vpop.f32.mrb[83].mxu0  ;;  %3531 = vmatprep.subr.bf16.mxu1 %v3761_v0 }
0x225b   :  { %v2714_v33 = vpack.c.bf16 %v2713_v7, %v2713_v7 }
0x225e   :  { %v2830_v11 = vpop.f32.mrb[84].mxu0 }
0x225f   :  { %v2831_v14 = vadd.f32 %v3080_v6, %v2830_v11  ;;  %3520 = vmatmul.mubr.msk.bf16.vlgmr.msra.gmra.mrb[80].mxu1 %vm1944_vm4, %v2714_v33  ;;  %v3529_v16 = vpop.f32.mrb[85].mxu0 }
0x2260   :  { %v2833_v17 = vpop.f32.mrb[86].mxu0  ;;  %3532 = vmatpush3.bf16.msra.mxu1 %v3611_v10  ;;  %3533 = vmatprep.mubr.msk.bf16.mxu1 %vm3763_vm0, %v3761_v0 }
0x2261   :  { %v2836_v34 = vmax.f32 %v2831_v14, 0.0  ;;  %v3530_v13 = vpop.f32.mrb[87].mxu0 }
0x2263   :  { %v2837_v15 = vpack.c.bf16 %v2836_v34, %v2836_v34 }
0x2267   :  { %3534 = vmatmul.mubr.msk.bf16.vlgmr.msra.gmra.mrb[84].mxu1 %vm1944_vm4, %v2837_v15 }
0x232a   :  { %v2629_v20 = vpop.f32.mrb[76].mxu1 }
0x232b   :  { %v2630_v0 = vadd.f32 %v3068_v49, %v2629_v20  ;;  %v3507_v35 = vpop.f32.mrb[77].mxu1 }
0x232c   :  { %v2632_v18 = vpop.f32.mrb[78].mxu1 }
0x232d   :  { %v3071_v21 = vmul.f32 -1.442695, %v2630_v0  ;;  %v2633_v23 = vadd.f32 %v3068_v49, %v2632_v18  ;;  %v3508_v22 = vpop.f32.mrb[79].mxu1 }
0x232f   :  { %3740 = vpow2.f32 %v3071_v21  ;;  %v3072_v24 = vmul.f32 -1.442695, %v2633_v23 }
0x2331   :  { %3742 = vpow2.f32 %v3072_v24 }
0x2332   :  { %v2767_v26 = vpop.f32.mrb[80].mxu1 }
0x2333   :  { %v2768_v27 = vadd.f32 %v3077_v25, %v2767_v26  ;;  %v3521_v19 = vpop.f32.mrb[81].mxu1 }
0x2334   :  { %v2770_v8 = vpop.f32.mrb[82].mxu1 }
0x2335   :  { %2915 = vrot.lane.b32.xlu0 %v2768_v27, %s3766_s18  ;;  %v3522_v39 = vpop.f32.mrb[83].mxu1  ;;  %s2976_s18 = sld [smem:[%s4382_s0 + %s3798_s27]]  }
0x2339   :  { %v3741_v29 = vpop.eup %3740 }
0x233a   :  { %v2642_v30 = vadd.f32 1.0, %v3741_v29  ;;  %v2890_v32 = vpop.f32.mrb[84].mxu1 }
0x233b   :  { %v3743_v36 = vpop.eup %3742  ;;  %v2891_v37 = vadd.f32 %v3084_v28, %v2890_v32  ;;  %v3535_v38 = vpop.f32.mrb[85].mxu1 }
0x233c   :  { %3744 = vrcp.f32 %v2642_v30  ;;  %v2643_v44 = vadd.f32 1.0, %v3743_v36  ;;  %v2893_v43 = vpop.f32.mrb[86].mxu1 }
0x233d   :  { %v2899_v45 = vand.u32 2147483647, %v2891_v37  ;;  %v3536_v42 = vpop.f32.mrb[87].mxu1  ;;  %v2896_v59 = vmax.f32 %v2891_v37, 0.0  ;;  %vm2897_vm7 = vcmp.ne.f32.partialorder %v2891_v37, %v2891_v37 }
0x233e   :  { %3746 = vrcp.f32 %v2643_v44 }
0x233f   :  { %v2900_v46 = vsub.f32 0.0, %v2899_v45 }
0x2341   :  { %v2901_v47 = vmul.f32 1.442695, %v2900_v46 }
0x2343   :  { %3748 = vpow2.f32 %v2901_v47 }
0x2346   :  { %v3745_v48 = vpop.eup %3744 }
0x2347   :  { %v2929_v50 = vsel %vm2928_vm5, %v3745_v48, 0.0 }
0x2348   :  { %v3747_v51 = vpop.eup %3746  ;;  %2931 = vst [vmem:[%s2976_s18] sm:$0xff] %v2929_v50 }
0x2349   :  { %v2930_v52 = vsel %vm2928_vm5, %v3747_v51, 0.0 }
0x234a   :  { %2932 = vst [vmem:[%s2976_s18 + $0x8] sm:$0xff] %v2930_v52 }
0x234d   :  { %v3749_v53 = vpop.eup %3748 }
0x234e   :  { %v2903_v54 = vadd.f32 1.0, %v3749_v53  ;;  %v2906_v55 = vmul.f32 -0.5, %v3749_v53  ;;  %v2909_v12 = vand.u32 2147483647, %v3749_v53 }
0x2350   :  { %3750 = vlog2.f32 %v2903_v54  ;;  %v2907_v40 = vadd.f32 1.0, %v2906_v55  ;;  %vm2910_vm6 = vcmp.lt.f32.partialorder %v2909_v12, 0.0004427343 }
0x2352   :  { %v2908_v58 = vmul.f32 %v3749_v53, %v2907_v40 }
0x235a   :  { %v3751_v56 = vpop.eup %3750 }
0x235b   :  { %v2905_v57 = vmul.f32 0.6931472, %v3751_v56 }
0x235d   :  { %v2911_v60 = vsel %vm2910_vm6, %v2908_v58, %v2905_v57 }
0x235e   :  { %v2912_v61 = vadd.f32 %v2911_v60, %v2896_v59 }
0x2360   :  { %v2913_v62 = vsel %vm2897_vm7, %v2891_v37, %v2912_v61 }
0x2361   :  { %2919 = vrot.lane.b32.xlu1 %v2913_v62, %s3798_s27 }
0x23a7   :  { %v2916_v63 = vpop.permute.xlu0 %2915 }
0x23a8   :  { %v2922_v1 = vsel %vm303_vm3, %v4281_v31, %v2916_v63 }
0x23d3   :  { %v2920_v9 = vpop.permute.xlu1 %2919 }
0x23d4   :  { %v2924_v2 = vsel %vm2923_vm8, %v2922_v1, %v2920_v9 }
0x23d5   :  { %v2926_v4 = vsel %vm2925_vm9, %v2924_v2, 0.0 }
0x23d6   :  { %2927 = vst [vmem:[%s2975_s3] sm:$0xff] %v2926_v4 }

</bundles_post_ra>
